<compile_context>
chip_gen: v5e
topology: v5e:2x2
jax: 0.10.0
libtpu: 0.0.40
codegen_flags: <defaults>
</compile_context>

<pallas_src>
import functools

import jax
import jax.numpy as jnp
from jax import lax
from jax.experimental import pallas as pl
from jax.experimental.pallas import tpu as pltpu

EPS = 1e-5


def _bn_relu_lanedense(y, gamma_t, beta_t, proj):
    """Training-mode BatchNorm + ReLU on a lane-dense (rows, W*C) activation, all f32.

    proj = kron(ones(W, W), eye(C)) / (N*H*W): the lane-mixing per-channel fold runs on the
    MXU; only a small rows-axis (sublane) sum remains on the XLU.  gamma_t / beta_t are the
    per-channel affine params tiled to (1, W*C).  Biased variance (PyTorch forward) computed
    as E[x^2] - E[x]^2 (fine for zero-ish-mean data; see review note on cancellation).
    """
    m_rows = jnp.dot(y, proj, preferred_element_type=jnp.float32)       # (R, W*C)
    q_rows = jnp.dot(y * y, proj, preferred_element_type=jnp.float32)   # (R, W*C)
    mean = jnp.sum(m_rows, axis=0, keepdims=True)                       # (1, W*C), tiled over w
    ex2 = jnp.sum(q_rows, axis=0, keepdims=True)
    var = ex2 - mean * mean
    out = (y - mean) * lax.rsqrt(var + EPS) * gamma_t + beta_t
    return jnp.maximum(out, 0.0)


def bottleneck2_kernel(x_ref, g1_ref, b1_ref, p1_ref, w1_ref,
                       g2_ref, b2_ref, p2_ref, w2_ref,
                       g3_ref, b3_ref, p3_ref, w3_ref,
                       o_ref, tp_ref, *, N, H):
    LC1 = tp_ref.shape[1]                     # W * C1 lanes of the y-padded bf16 scratch

    # ---- bn1 -> relu -> conv1 (1x1 conv == one block-diagonal lane-dense matmul) ------------
    a1 = _bn_relu_lanedense(x_ref[...], g1_ref[...], b1_ref[...], p1_ref[...])
    y1 = jnp.dot(a1.astype(jnp.bfloat16), w1_ref[...],
                 preferred_element_type=jnp.float32)                    # (R, W*C1) f32
    # x goes dead here; the residual re-reads x_ref at the end (keeps vreg pressure low).

    # ---- bn2 -> relu -> y-halo-padded bf16 scratch (halo-only zero, interior written once) --
    a2 = _bn_relu_lanedense(y1, g2_ref[...], b2_ref[...], p2_ref[...])  # (R, W*C1) f32
    zrow = jnp.zeros((1, LC1), jnp.float32)
    for n in range(N):            # TODO(synk): becomes the row-tiled grid axis at prod sizes
        block = jnp.concatenate([zrow, a2[n * H:(n + 1) * H, :], zrow], axis=0)
        tp_ref[n * (H + 2):(n + 1) * (H + 2), :] = block.astype(jnp.bfloat16)

    # ---- conv2 (3x3, stride 1, pad 1): 3 accumulated banded matmuls, one per dy -------------
    blocks = []
    for n in range(N):
        base = n * (H + 2)
        acc_n = jnp.dot(tp_ref[base:base + H, :], w2_ref[0],
                        preferred_element_type=jnp.float32)
        acc_n += jnp.dot(tp_ref[base + 1:base + 1 + H, :], w2_ref[1],
                         preferred_element_type=jnp.float32)
        acc_n += jnp.dot(tp_ref[base + 2:base + 2 + H, :], w2_ref[2],
                         preferred_element_type=jnp.float32)
        blocks.append(acc_n)                                            # (H, W*C2) f32
    y2 = jnp.concatenate(blocks, axis=0)                                # (R, W*C2) f32

    # ---- bn3 -> relu -> conv3 (1x1) -> identity residual -------------------------------------
    a3 = _bn_relu_lanedense(y2, g3_ref[...], b3_ref[...], p3_ref[...])
    y3 = jnp.dot(a3.astype(jnp.bfloat16), w3_ref[...],
                 preferred_element_type=jnp.float32)                    # (R, W*Cout) f32
    o_ref[...] = y3 + x_ref[...]              # fresh residual read; lane-dense (256-lane) store


def bottleneck2_forward(x_nchw, params):
    N, Cin, H, W = x_nchw.shape
    C1 = params["w1"].shape[1]
    C2 = params["w2"].shape[2]
    Cout = params["w3"].shape[1]
    assert Cout == Cin, "identity residual requires planes*16 == inplanes"
    R = N * H
    count = N * H * W

    # Lane-dense layout: row = (n, h); lane = w * C + c (w-major, channel-minor).
    x_ld = jnp.transpose(x_nchw, (0, 2, 3, 1)).reshape(R, W * Cin)

    eye_w = jnp.eye(W, dtype=jnp.float32)
    ones_w = jnp.ones((W, W), dtype=jnp.float32)

    # 1x1 convs -> block-diagonal lane-dense matmuls (bf16 MXU operands, f32 accumulation).
    w1b = jnp.kron(eye_w, params["w1"]).astype(jnp.bfloat16)            # (W*Cin, W*C1)
    w3b = jnp.kron(eye_w, params["w3"]).astype(jnp.bfloat16)            # (W*C2, W*Cout)

    # 3x3 conv -> one banded block-Toeplitz RHS per dy; x padding handled by band clipping.
    w2r = params["w2"].reshape(3, 3, C1, C2)
    w2b = jnp.zeros((3, W * C1, W * C2), jnp.float32)
    for dy in range(3):
        for dx in range(3):
            for xx in range(W):
                xp = xx + dx - 1
                if 0 <= xp < W:
                    w2b = w2b.at[dy, xp * C1:(xp + 1) * C1,
                                 xx * C2:(xx + 1) * C2].set(w2r[dy, dx])
    w2b = w2b.astype(jnp.bfloat16)

    # BN per-channel fold projectors (run on the MXU) and lane-tiled affine params.
    p1 = jnp.kron(ones_w, jnp.eye(Cin, dtype=jnp.float32)) / count      # (W*Cin, W*Cin)
    p2 = jnp.kron(ones_w, jnp.eye(C1, dtype=jnp.float32)) / count
    p3 = jnp.kron(ones_w, jnp.eye(C2, dtype=jnp.float32)) / count
    g1t = jnp.tile(params["g1"].reshape(1, Cin), (1, W))
    b1t = jnp.tile(params["b1"].reshape(1, Cin), (1, W))
    g2t = jnp.tile(params["g2"].reshape(1, C1), (1, W))
    b2t = jnp.tile(params["b2"].reshape(1, C1), (1, W))
    g3t = jnp.tile(params["g3"].reshape(1, C2), (1, W))
    b3t = jnp.tile(params["b3"].reshape(1, C2), (1, W))

    inputs = (x_ld, g1t, b1t, p1, w1b, g2t, b2t, p2, w2b, g3t, b3t, p3, w3b)

    flops = 2 * R * ((W * Cin) * (W * C1) + 3 * (W * C1) * (W * C2) + (W * C2) * (W * Cout)
                     + 2 * ((W * Cin) ** 2 + (W * C1) ** 2 + (W * C2) ** 2))
    bytes_accessed = sum(int(a.size) * a.dtype.itemsize for a in inputs) + R * W * Cout * 4
    cost = pl.CostEstimate(flops=int(flops),
                           transcendentals=int(W * (Cin + C1 + C2)),
                           bytes_accessed=int(bytes_accessed))

    of = pl.pallas_call(
        functools.partial(bottleneck2_kernel, N=N, H=H),
        out_shape=jax.ShapeDtypeStruct((R, W * Cout), jnp.float32),
        in_specs=[pl.BlockSpec(memory_space=pltpu.MemorySpace.VMEM) for _ in inputs],
        out_specs=pl.BlockSpec(memory_space=pltpu.MemorySpace.VMEM),
        scratch_shapes=[pltpu.VMEM((N * (H + 2), W * C1), jnp.bfloat16)],
        input_output_aliases={0: 0},   # residual path reuses x_ld's HBM buffer (same shape/dtype)
        cost_estimate=cost,
        compiler_params=pltpu.CompilerParams(vmem_limit_bytes=32 * 1024 * 1024),
        # TODO(synk): for the row-tiled version, add dimension_semantics=("parallel", ...) on
        #             the row axis (v7x 2nd TensorCore) and size the tile against 64 MiB VMEM.
    )(*inputs)

    return jnp.transpose(of.reshape(N, H, W, Cout), (0, 3, 1, 2))


def reference_forward(x_nchw, params):
    """Pure-JAX reference mirroring the PyTorch module (training-mode BN, f32, NCHW in/out)."""
    x = jnp.transpose(x_nchw, (0, 2, 3, 1))

    def bn_relu(v, g, b):
        m = jnp.mean(v, axis=(0, 1, 2), keepdims=True)
        var = jnp.mean((v - m) ** 2, axis=(0, 1, 2), keepdims=True)
        return jnp.maximum((v - m) * lax.rsqrt(var + EPS) * g.reshape(1, 1, 1, -1)
                           + b.reshape(1, 1, 1, -1), 0.0)

    h = bn_relu(x, params["g1"], params["b1"])
    h = jnp.einsum("nhwc,cd->nhwd", h, params["w1"])
    h = bn_relu(h, params["g2"], params["b2"])
    w2_hwio = params["w2"].reshape(3, 3, params["w2"].shape[1], params["w2"].shape[2])
    h = lax.conv_general_dilated(h, w2_hwio, (1, 1), "SAME",
                                 dimension_numbers=("NHWC", "HWIO", "NHWC"))
    h = bn_relu(h, params["g3"], params["b3"])
    h = jnp.einsum("nhwc,cd->nhwd", h, params["w3"])
    return jnp.transpose(h + x, (0, 3, 1, 2))


if __name__ == "__main__":
    # Module config: inplanes=32, planes=2 (expansion=16 -> planes*16 == inplanes),
    # cfg=[32, 16, 16], stride=1, downsample=None.
    N, H, W = 2, 8, 8
    inplanes, planes = 32, 2
    cfg = [32, 16, 16]
    Cin, C1, C2, Cout = cfg[0], cfg[1], cfg[2], planes * 16
    assert Cin == inplanes and Cout == inplanes

    key = jax.random.PRNGKey(0)
    ks = jax.random.split(key, 10)
    params = {
        "g1": 1.0 + 0.1 * jax.random.normal(ks[0], (1, Cin), jnp.float32),
        "b1": 0.1 * jax.random.normal(ks[1], (1, Cin), jnp.float32),
        "w1": jax.random.normal(ks[2], (Cin, C1), jnp.float32) / jnp.sqrt(Cin),
        "g2": 1.0 + 0.1 * jax.random.normal(ks[3], (1, C1), jnp.float32),
        "b2": 0.1 * jax.random.normal(ks[4], (1, C1), jnp.float32),
        "w2": jax.random.normal(ks[5], (9, C1, C2), jnp.float32) / jnp.sqrt(9 * C1),
        "g3": 1.0 + 0.1 * jax.random.normal(ks[6], (1, C2), jnp.float32),
        "b3": 0.1 * jax.random.normal(ks[7], (1, C2), jnp.float32),
        "w3": jax.random.normal(ks[8], (C2, Cout), jnp.float32) / jnp.sqrt(C2),
    }
    x = jax.random.normal(ks[9], (N, Cin, H, W), jnp.float32)

    out = jax.block_until_ready(jax.jit(bottleneck2_forward)(x, params))
    ref = jax.block_until_ready(reference_forward(x, params))

    assert out.shape == (N, Cout, H, W), out.shape
    # bf16 MXU conv operands + MXU-folded BN statistics vs the pure-f32 reference -> loosened
    # tolerance (residual add uses the exact f32 x, so errors are confined to the conv path).
    if not jnp.allclose(out, ref, rtol=4e-2, atol=4e-2):
        raise RuntimeError(f"mismatch: max abs err = {jnp.max(jnp.abs(out - ref))}")
    print("KERNEL_OK")
</pallas_src>

<mosaic_0001>
module attributes {stable_mosaic.version = 11 : i64} {
  func.func @bottleneck2_kernel(%arg0: memref<16x256xf32, #tpu.memory_space<vmem>>, %arg1: memref<1x256xf32, #tpu.memory_space<vmem>>, %arg2: memref<1x256xf32, #tpu.memory_space<vmem>>, %arg3: memref<256x256xf32, #tpu.memory_space<vmem>>, %arg4: memref<256x128xbf16, #tpu.memory_space<vmem>>, %arg5: memref<1x128xf32, #tpu.memory_space<vmem>>, %arg6: memref<1x128xf32, #tpu.memory_space<vmem>>, %arg7: memref<128x128xf32, #tpu.memory_space<vmem>>, %arg8: memref<3x128x128xbf16, #tpu.memory_space<vmem>>, %arg9: memref<1x128xf32, #tpu.memory_space<vmem>>, %arg10: memref<1x128xf32, #tpu.memory_space<vmem>>, %arg11: memref<128x128xf32, #tpu.memory_space<vmem>>, %arg12: memref<128x256xbf16, #tpu.memory_space<vmem>>, %arg13: memref<16x256xf32, #tpu.memory_space<vmem>>, %arg14: memref<20x128xbf16, #tpu.memory_space<vmem>>) attributes {dimension_semantics = [], scalar_prefetch = 0 : i64, scratch_operands = 1 : i64, tpu.core_type = #tpu.core_type<tc>} {
    %c0 = arith.constant 0 : index
    %c0_0 = arith.constant 0 : index
    %0 = vector.load %arg0[%c0, %c0_0] : memref<16x256xf32, #tpu.memory_space<vmem>>, vector<16x256xf32>
    %c0_1 = arith.constant 0 : index
    %c0_2 = arith.constant 0 : index
    %1 = vector.load %arg1[%c0_1, %c0_2] : memref<1x256xf32, #tpu.memory_space<vmem>>, vector<1x256xf32>
    %c0_3 = arith.constant 0 : index
    %c0_4 = arith.constant 0 : index
    %2 = vector.load %arg2[%c0_3, %c0_4] : memref<1x256xf32, #tpu.memory_space<vmem>>, vector<1x256xf32>
    %c0_5 = arith.constant 0 : index
    %c0_6 = arith.constant 0 : index
    %3 = vector.load %arg3[%c0_5, %c0_6] : memref<256x256xf32, #tpu.memory_space<vmem>>, vector<256x256xf32>
    %cst = arith.constant dense<0.000000e+00> : vector<16x256xf32>
    %4 = tpu.matmul %0, %3, %cst {dimension_numbers = #tpu.dot_dimension_numbers<[1], [0], [0], [1], [0, 0, 1, 1], [], []>} : vector<16x256xf32>, vector<256x256xf32>, vector<16x256xf32> -> vector<16x256xf32>
    %5 = arith.mulf %0, %0 : vector<16x256xf32>
    %cst_7 = arith.constant dense<0.000000e+00> : vector<16x256xf32>
    %6 = tpu.matmul %5, %3, %cst_7 {dimension_numbers = #tpu.dot_dimension_numbers<[1], [0], [0], [1], [0, 0, 1, 1], [], []>} : vector<16x256xf32>, vector<256x256xf32>, vector<16x256xf32> -> vector<16x256xf32>
    %cst_8 = arith.constant dense<0.000000e+00> : vector<256xf32>
    %7 = vector.multi_reduction <add>, %4, %cst_8 [0] : vector<16x256xf32> to vector<256xf32>
    %8 = vector.shape_cast %7 : vector<256xf32> to vector<1x256xf32>
    %cst_9 = arith.constant dense<0.000000e+00> : vector<256xf32>
    %9 = vector.multi_reduction <add>, %6, %cst_9 [0] : vector<16x256xf32> to vector<256xf32>
    %10 = vector.shape_cast %9 : vector<256xf32> to vector<1x256xf32>
    %11 = arith.mulf %8, %8 : vector<1x256xf32>
    %12 = arith.subf %10, %11 : vector<1x256xf32>
    %13 = vector.broadcast %8 : vector<1x256xf32> to vector<16x256xf32>
    %14 = arith.subf %0, %13 : vector<16x256xf32>
    %cst_10 = arith.constant 9.99999974E-6 : f32
    %15 = vector.broadcast %cst_10 : f32 to vector<1x256xf32>
    %16 = arith.addf %12, %15 : vector<1x256xf32>
    %17 = math.rsqrt %16 : vector<1x256xf32>
    %18 = vector.broadcast %17 : vector<1x256xf32> to vector<16x256xf32>
    %19 = arith.mulf %14, %18 : vector<16x256xf32>
    %20 = vector.broadcast %1 : vector<1x256xf32> to vector<16x256xf32>
    %21 = arith.mulf %19, %20 : vector<16x256xf32>
    %22 = vector.broadcast %2 : vector<1x256xf32> to vector<16x256xf32>
    %23 = arith.addf %21, %22 : vector<16x256xf32>
    %cst_11 = arith.constant 0.000000e+00 : f32
    %24 = vector.broadcast %cst_11 : f32 to vector<16x256xf32>
    %25 = arith.maximumf %23, %24 : vector<16x256xf32>
    %26 = arith.truncf %25 : vector<16x256xf32> to vector<16x256xbf16>
    %c0_12 = arith.constant 0 : index
    %c0_13 = arith.constant 0 : index
    %27 = vector.load %arg4[%c0_12, %c0_13] : memref<256x128xbf16, #tpu.memory_space<vmem>>, vector<256x128xbf16>
    %cst_14 = arith.constant dense<0.000000e+00> : vector<16x128xf32>
    %28 = tpu.matmul %26, %27, %cst_14 {dimension_numbers = #tpu.dot_dimension_numbers<[1], [0], [0], [1], [0, 0, 1, 1], [], []>} : vector<16x256xbf16>, vector<256x128xbf16>, vector<16x128xf32> -> vector<16x128xf32>
    %c0_15 = arith.constant 0 : index
    %c0_16 = arith.constant 0 : index
    %29 = vector.load %arg5[%c0_15, %c0_16] : memref<1x128xf32, #tpu.memory_space<vmem>>, vector<1x128xf32>
    %c0_17 = arith.constant 0 : index
    %c0_18 = arith.constant 0 : index
    %30 = vector.load %arg6[%c0_17, %c0_18] : memref<1x128xf32, #tpu.memory_space<vmem>>, vector<1x128xf32>
    %c0_19 = arith.constant 0 : index
    %c0_20 = arith.constant 0 : index
    %31 = vector.load %arg7[%c0_19, %c0_20] : memref<128x128xf32, #tpu.memory_space<vmem>>, vector<128x128xf32>
    %cst_21 = arith.constant dense<0.000000e+00> : vector<16x128xf32>
    %32 = tpu.matmul %28, %31, %cst_21 {dimension_numbers = #tpu.dot_dimension_numbers<[1], [0], [0], [1], [0, 0, 1, 1], [], []>} : vector<16x128xf32>, vector<128x128xf32>, vector<16x128xf32> -> vector<16x128xf32>
    %33 = arith.mulf %28, %28 : vector<16x128xf32>
    %cst_22 = arith.constant dense<0.000000e+00> : vector<16x128xf32>
    %34 = tpu.matmul %33, %31, %cst_22 {dimension_numbers = #tpu.dot_dimension_numbers<[1], [0], [0], [1], [0, 0, 1, 1], [], []>} : vector<16x128xf32>, vector<128x128xf32>, vector<16x128xf32> -> vector<16x128xf32>
    %cst_23 = arith.constant dense<0.000000e+00> : vector<128xf32>
    %35 = vector.multi_reduction <add>, %32, %cst_23 [0] : vector<16x128xf32> to vector<128xf32>
    %36 = vector.shape_cast %35 : vector<128xf32> to vector<1x128xf32>
    %cst_24 = arith.constant dense<0.000000e+00> : vector<128xf32>
    %37 = vector.multi_reduction <add>, %34, %cst_24 [0] : vector<16x128xf32> to vector<128xf32>
    %38 = vector.shape_cast %37 : vector<128xf32> to vector<1x128xf32>
    %39 = arith.mulf %36, %36 : vector<1x128xf32>
    %40 = arith.subf %38, %39 : vector<1x128xf32>
    %41 = vector.broadcast %36 : vector<1x128xf32> to vector<16x128xf32>
    %42 = arith.subf %28, %41 : vector<16x128xf32>
    %cst_25 = arith.constant 9.99999974E-6 : f32
    %43 = vector.broadcast %cst_25 : f32 to vector<1x128xf32>
    %44 = arith.addf %40, %43 : vector<1x128xf32>
    %45 = math.rsqrt %44 : vector<1x128xf32>
    %46 = vector.broadcast %45 : vector<1x128xf32> to vector<16x128xf32>
    %47 = arith.mulf %42, %46 : vector<16x128xf32>
    %48 = vector.broadcast %29 : vector<1x128xf32> to vector<16x128xf32>
    %49 = arith.mulf %47, %48 : vector<16x128xf32>
    %50 = vector.broadcast %30 : vector<1x128xf32> to vector<16x128xf32>
    %51 = arith.addf %49, %50 : vector<16x128xf32>
    %cst_26 = arith.constant 0.000000e+00 : f32
    %52 = vector.broadcast %cst_26 : f32 to vector<16x128xf32>
    %53 = arith.maximumf %51, %52 : vector<16x128xf32>
    %cst_27 = arith.constant 0.000000e+00 : f32
    %54 = vector.broadcast %cst_27 : f32 to vector<1x128xf32>
    %55 = vector.extract_strided_slice %53 {offsets = [0, 0], sizes = [8, 128], strides = [1, 1]} : vector<16x128xf32> to vector<8x128xf32>
    %56 = tpu.concatenate %54, %55, %54 in 0 : vector<1x128xf32>, vector<8x128xf32>, vector<1x128xf32> -> vector<10x128xf32>
    %57 = arith.truncf %56 : vector<10x128xf32> to vector<10x128xbf16>
    %c0_28 = arith.constant 0 : index
    %c0_29 = arith.constant 0 : index
    %58 = vector.load %arg14[%c0_28, %c0_29] : memref<20x128xbf16, #tpu.memory_space<vmem>>, vector<10x128xbf16>
    tpu.vector_store %arg14[%c0_28, %c0_29], %57 {strides = array<i32>} : memref<20x128xbf16, #tpu.memory_space<vmem>>, vector<10x128xbf16>,
    %59 = vector.extract_strided_slice %53 {offsets = [8, 0], sizes = [8, 128], strides = [1, 1]} : vector<16x128xf32> to vector<8x128xf32>
    %60 = tpu.concatenate %54, %59, %54 in 0 : vector<1x128xf32>, vector<8x128xf32>, vector<1x128xf32> -> vector<10x128xf32>
    %61 = arith.truncf %60 : vector<10x128xf32> to vector<10x128xbf16>
    %c10 = arith.constant 10 : index
    %c0_30 = arith.constant 0 : index
    %62 = vector.load %arg14[%c10, %c0_30] : memref<20x128xbf16, #tpu.memory_space<vmem>>, vector<10x128xbf16>
    tpu.vector_store %arg14[%c10, %c0_30], %61 {strides = array<i32>} : memref<20x128xbf16, #tpu.memory_space<vmem>>, vector<10x128xbf16>,
    %c0_31 = arith.constant 0 : index
    %c0_32 = arith.constant 0 : index
    %63 = vector.load %arg14[%c0_31, %c0_32] : memref<20x128xbf16, #tpu.memory_space<vmem>>, vector<8x128xbf16>
    %c0_33 = arith.constant 0 : index
    %c0_34 = arith.constant 0 : index
    %c0_35 = arith.constant 0 : index
    %64 = vector.load %arg8[%c0_33, %c0_34, %c0_35] : memref<3x128x128xbf16, #tpu.memory_space<vmem>>, vector<1x128x128xbf16>
    %65 = vector.shape_cast %64 : vector<1x128x128xbf16> to vector<128x128xbf16>
    %cst_36 = arith.constant dense<0.000000e+00> : vector<8x128xf32>
    %66 = tpu.matmul %63, %65, %cst_36 {dimension_numbers = #tpu.dot_dimension_numbers<[1], [0], [0], [1], [0, 0, 1, 1], [], []>} : vector<8x128xbf16>, vector<128x128xbf16>, vector<8x128xf32> -> vector<8x128xf32>
    %c1 = arith.constant 1 : index
    %c0_37 = arith.constant 0 : index
    %67 = vector.load %arg14[%c1, %c0_37] : memref<20x128xbf16, #tpu.memory_space<vmem>>, vector<8x128xbf16>
    %c1_38 = arith.constant 1 : index
    %c0_39 = arith.constant 0 : index
    %c0_40 = arith.constant 0 : index
    %68 = vector.load %arg8[%c1_38, %c0_39, %c0_40] : memref<3x128x128xbf16, #tpu.memory_space<vmem>>, vector<1x128x128xbf16>
    %69 = vector.shape_cast %68 : vector<1x128x128xbf16> to vector<128x128xbf16>
    %cst_41 = arith.constant dense<0.000000e+00> : vector<8x128xf32>
    %70 = tpu.matmul %67, %69, %cst_41 {dimension_numbers = #tpu.dot_dimension_numbers<[1], [0], [0], [1], [0, 0, 1, 1], [], []>} : vector<8x128xbf16>, vector<128x128xbf16>, vector<8x128xf32> -> vector<8x128xf32>
    %71 = arith.addf %66, %70 : vector<8x128xf32>
    %c2 = arith.constant 2 : index
    %c0_42 = arith.constant 0 : index
    %72 = vector.load %arg14[%c2, %c0_42] : memref<20x128xbf16, #tpu.memory_space<vmem>>, vector<8x128xbf16>
    %c2_43 = arith.constant 2 : index
    %c0_44 = arith.constant 0 : index
    %c0_45 = arith.constant 0 : index
    %73 = vector.load %arg8[%c2_43, %c0_44, %c0_45] : memref<3x128x128xbf16, #tpu.memory_space<vmem>>, vector<1x128x128xbf16>
    %74 = vector.shape_cast %73 : vector<1x128x128xbf16> to vector<128x128xbf16>
    %cst_46 = arith.constant dense<0.000000e+00> : vector<8x128xf32>
    %75 = tpu.matmul %72, %74, %cst_46 {dimension_numbers = #tpu.dot_dimension_numbers<[1], [0], [0], [1], [0, 0, 1, 1], [], []>} : vector<8x128xbf16>, vector<128x128xbf16>, vector<8x128xf32> -> vector<8x128xf32>
    %76 = arith.addf %71, %75 : vector<8x128xf32>
    %c10_47 = arith.constant 10 : index
    %c0_48 = arith.constant 0 : index
    %77 = vector.load %arg14[%c10_47, %c0_48] : memref<20x128xbf16, #tpu.memory_space<vmem>>, vector<8x128xbf16>
    %c0_49 = arith.constant 0 : index
    %c0_50 = arith.constant 0 : index
    %c0_51 = arith.constant 0 : index
    %78 = vector.load %arg8[%c0_49, %c0_50, %c0_51] : memref<3x128x128xbf16, #tpu.memory_space<vmem>>, vector<1x128x128xbf16>
    %79 = vector.shape_cast %78 : vector<1x128x128xbf16> to vector<128x128xbf16>
    %cst_52 = arith.constant dense<0.000000e+00> : vector<8x128xf32>
    %80 = tpu.matmul %77, %79, %cst_52 {dimension_numbers = #tpu.dot_dimension_numbers<[1], [0], [0], [1], [0, 0, 1, 1], [], []>} : vector<8x128xbf16>, vector<128x128xbf16>, vector<8x128xf32> -> vector<8x128xf32>
    %c11 = arith.constant 11 : index
    %c0_53 = arith.constant 0 : index
    %81 = vector.load %arg14[%c11, %c0_53] : memref<20x128xbf16, #tpu.memory_space<vmem>>, vector<8x128xbf16>
    %c1_54 = arith.constant 1 : index
    %c0_55 = arith.constant 0 : index
    %c0_56 = arith.constant 0 : index
    %82 = vector.load %arg8[%c1_54, %c0_55, %c0_56] : memref<3x128x128xbf16, #tpu.memory_space<vmem>>, vector<1x128x128xbf16>
    %83 = vector.shape_cast %82 : vector<1x128x128xbf16> to vector<128x128xbf16>
    %cst_57 = arith.constant dense<0.000000e+00> : vector<8x128xf32>
    %84 = tpu.matmul %81, %83, %cst_57 {dimension_numbers = #tpu.dot_dimension_numbers<[1], [0], [0], [1], [0, 0, 1, 1], [], []>} : vector<8x128xbf16>, vector<128x128xbf16>, vector<8x128xf32> -> vector<8x128xf32>
    %85 = arith.addf %80, %84 : vector<8x128xf32>
    %c12 = arith.constant 12 : index
    %c0_58 = arith.constant 0 : index
    %86 = vector.load %arg14[%c12, %c0_58] : memref<20x128xbf16, #tpu.memory_space<vmem>>, vector<8x128xbf16>
    %c2_59 = arith.constant 2 : index
    %c0_60 = arith.constant 0 : index
    %c0_61 = arith.constant 0 : index
    %87 = vector.load %arg8[%c2_59, %c0_60, %c0_61] : memref<3x128x128xbf16, #tpu.memory_space<vmem>>, vector<1x128x128xbf16>
    %88 = vector.shape_cast %87 : vector<1x128x128xbf16> to vector<128x128xbf16>
    %cst_62 = arith.constant dense<0.000000e+00> : vector<8x128xf32>
    %89 = tpu.matmul %86, %88, %cst_62 {dimension_numbers = #tpu.dot_dimension_numbers<[1], [0], [0], [1], [0, 0, 1, 1], [], []>} : vector<8x128xbf16>, vector<128x128xbf16>, vector<8x128xf32> -> vector<8x128xf32>
    %90 = arith.addf %85, %89 : vector<8x128xf32>
    %91 = tpu.concatenate %76, %90 in 0 : vector<8x128xf32>, vector<8x128xf32> -> vector<16x128xf32>
    %c0_63 = arith.constant 0 : index
    %c0_64 = arith.constant 0 : index
    %92 = vector.load %arg9[%c0_63, %c0_64] : memref<1x128xf32, #tpu.memory_space<vmem>>, vector<1x128xf32>
    %c0_65 = arith.constant 0 : index
    %c0_66 = arith.constant 0 : index
    %93 = vector.load %arg10[%c0_65, %c0_66] : memref<1x128xf32, #tpu.memory_space<vmem>>, vector<1x128xf32>
    %c0_67 = arith.constant 0 : index
    %c0_68 = arith.constant 0 : index
    %94 = vector.load %arg11[%c0_67, %c0_68] : memref<128x128xf32, #tpu.memory_space<vmem>>, vector<128x128xf32>
    %cst_69 = arith.constant dense<0.000000e+00> : vector<16x128xf32>
    %95 = tpu.matmul %91, %94, %cst_69 {dimension_numbers = #tpu.dot_dimension_numbers<[1], [0], [0], [1], [0, 0, 1, 1], [], []>} : vector<16x128xf32>, vector<128x128xf32>, vector<16x128xf32> -> vector<16x128xf32>
    %96 = arith.mulf %91, %91 : vector<16x128xf32>
    %cst_70 = arith.constant dense<0.000000e+00> : vector<16x128xf32>
    %97 = tpu.matmul %96, %94, %cst_70 {dimension_numbers = #tpu.dot_dimension_numbers<[1], [0], [0], [1], [0, 0, 1, 1], [], []>} : vector<16x128xf32>, vector<128x128xf32>, vector<16x128xf32> -> vector<16x128xf32>
    %cst_71 = arith.constant dense<0.000000e+00> : vector<128xf32>
    %98 = vector.multi_reduction <add>, %95, %cst_71 [0] : vector<16x128xf32> to vector<128xf32>
    %99 = vector.shape_cast %98 : vector<128xf32> to vector<1x128xf32>
    %cst_72 = arith.constant dense<0.000000e+00> : vector<128xf32>
    %100 = vector.multi_reduction <add>, %97, %cst_72 [0] : vector<16x128xf32> to vector<128xf32>
    %101 = vector.shape_cast %100 : vector<128xf32> to vector<1x128xf32>
    %102 = arith.mulf %99, %99 : vector<1x128xf32>
    %103 = arith.subf %101, %102 : vector<1x128xf32>
    %104 = vector.broadcast %99 : vector<1x128xf32> to vector<16x128xf32>
    %105 = arith.subf %91, %104 : vector<16x128xf32>
    %cst_73 = arith.constant 9.99999974E-6 : f32
    %106 = vector.broadcast %cst_73 : f32 to vector<1x128xf32>
    %107 = arith.addf %103, %106 : vector<1x128xf32>
    %108 = math.rsqrt %107 : vector<1x128xf32>
    %109 = vector.broadcast %108 : vector<1x128xf32> to vector<16x128xf32>
    %110 = arith.mulf %105, %109 : vector<16x128xf32>
    %111 = vector.broadcast %92 : vector<1x128xf32> to vector<16x128xf32>
    %112 = arith.mulf %110, %111 : vector<16x128xf32>
    %113 = vector.broadcast %93 : vector<1x128xf32> to vector<16x128xf32>
    %114 = arith.addf %112, %113 : vector<16x128xf32>
    %cst_74 = arith.constant 0.000000e+00 : f32
    %115 = vector.broadcast %cst_74 : f32 to vector<16x128xf32>
    %116 = arith.maximumf %114, %115 : vector<16x128xf32>
    %117 = arith.truncf %116 : vector<16x128xf32> to vector<16x128xbf16>
    %c0_75 = arith.constant 0 : index
    %c0_76 = arith.constant 0 : index
    %118 = vector.load %arg12[%c0_75, %c0_76] : memref<128x256xbf16, #tpu.memory_space<vmem>>, vector<128x256xbf16>
    %cst_77 = arith.constant dense<0.000000e+00> : vector<16x256xf32>
    %119 = tpu.matmul %117, %118, %cst_77 {dimension_numbers = #tpu.dot_dimension_numbers<[1], [0], [0], [1], [0, 0, 1, 1], [], []>} : vector<16x128xbf16>, vector<128x256xbf16>, vector<16x256xf32> -> vector<16x256xf32>
    %c0_78 = arith.constant 0 : index
    %c0_79 = arith.constant 0 : index
    %120 = vector.load %arg0[%c0_78, %c0_79] : memref<16x256xf32, #tpu.memory_space<vmem>>, vector<16x256xf32>
    %121 = arith.addf %119, %120 : vector<16x256xf32>
    %c0_80 = arith.constant 0 : index
    %c0_81 = arith.constant 0 : index
    %122 = vector.load %arg13[%c0_80, %c0_81] : memref<16x256xf32, #tpu.memory_space<vmem>>, vector<16x256xf32>
    tpu.vector_store %arg13[%c0_80, %c0_81], %121 {strides = array<i32>} : memref<16x256xf32, #tpu.memory_space<vmem>>, vector<16x256xf32>,
    return
  }
}

</mosaic_0001>

<bundles_post_ra>
// kernel: bottleneck2_forward.1
= control target key start
LH: loop header
LB: loop body
LE: loop exit
PB: predicated region body
PF: predicated region fallthrough
CT: control target
= control target key end

     0   :  { %vm656_vm9 = vcmask 1040384   ;;  %vm673_vm10 = vcmask 1044484   ;;  %s2567_s3 = inlined_call_operand.vmem [shape: f32[256,256], index: 3, kind: input, shape index: {}]   ;;  %s2568_s0 = inlined_call_operand.vmem [shape: f32[16,256], index: 0, kind: input, shape index: {}, may-alias: {0,13}]   ;;  %s2569_s4 = inlined_call_operand.vmem [shape: bf16[256,128], index: 4, kind: input, shape index: {}]   ;;  %s2570_s7 = inlined_call_operand.vmem [shape: f32[128,128], index: 7, kind: input, shape index: {}, may-alias: {7,11}]   ;;  %s2571_s1 = inlined_call_operand.vmem [shape: f32[1,256], index: 1, kind: input, shape index: {}]   ;;  %s2572_s2 = inlined_call_operand.vmem [shape: f32[1,256], index: 2, kind: input, shape index: {}]   ;;  %s2573_s5 = inlined_call_operand.vmem [shape: f32[1,128], index: 5, kind: input, shape index: {}]   ;;  %s2574_s6 = inlined_call_operand.vmem [shape: f32[1,128], index: 6, kind: input, shape index: {}]   ;;  %s2575_s8 = inlined_call_operand.vmem [shape: bf16[3,128,128], index: 8, kind: input, shape index: {}]   ;;  %s2576_s11 = inlined_call_operand.vmem [shape: f32[128,128], index: 11, kind: input, shape index: {}, may-alias: {7,11}]   ;;  %s2577_s9 = inlined_call_operand.vmem [shape: f32[1,128], index: 9, kind: input, shape index: {}]   ;;  %s2578_s10 = inlined_call_operand.vmem [shape: f32[1,128], index: 10, kind: input, shape index: {}]   ;;  %s2579_s12 = inlined_call_operand.vmem [shape: bf16[128,256], index: 12, kind: input, shape index: {}]   ;;  %s2580_s13 = inlined_call_operand.vmem [shape: f32[16,256], index: 13, kind: output, shape index: {}, may-alias: {0,13}]  }
   0x1   :  { %v1649_v0 = vld [vmem:[%s2567_s3 + $0xf0] sm:$0xff]  ;;  %v1659_v2 = vld [vmem:[%s2567_s3 + $0xf8] sm:$0xff]  ;;  %v1671_v4 = vld [vmem:[%s2567_s3 + $0xe0] sm:$0xff] }
   0x2   :  { %v1654_v1 = vld [vmem:[%s2567_s3 + $0x1f0] sm:$0xff]  ;;  %114 = vmatpush.msra.mxu0 %v1649_v0  ;;  %v1666_v3 = vld [vmem:[%s2567_s3 + $0x1f8] sm:$0xff]  ;;  %v1676_v5 = vld [vmem:[%s2567_s3 + $0x1e0] sm:$0xff]  ;;  %160 = vmatpush.msra.mxu2 %v1659_v2 }
   0x3   :  { %137 = vmatpush.msra.mxu1 %v1654_v1  ;;  %183 = vmatpush.msra.mxu3 %v1666_v3  ;;  %v1683_v6 = vld [vmem:[%s2567_s3 + $0xe8] sm:$0xff]  ;;  %v1693_v8 = vld [vmem:[%s2567_s3 + $0xd0] sm:$0xff]  ;;  %v1705_v10 = vld [vmem:[%s2567_s3 + $0xd8] sm:$0xff] }
   0x4   :  { %v1688_v7 = vld [vmem:[%s2567_s3 + $0x1e8] sm:$0xff]  ;;  %115 = vmatpush.msra.mxu0 %v1671_v4  ;;  %v1700_v9 = vld [vmem:[%s2567_s3 + $0x1d0] sm:$0xff]  ;;  %v1710_v11 = vld [vmem:[%s2567_s3 + $0x1d8] sm:$0xff]  ;;  %161 = vmatpush.msra.mxu2 %v1683_v6 }
   0x5   :  { %138 = vmatpush.msra.mxu1 %v1676_v5  ;;  %184 = vmatpush.msra.mxu3 %v1688_v7  ;;  %v1717_v12 = vld [vmem:[%s2567_s3 + $0xc0] sm:$0xff]  ;;  %v1729_v14 = vld [vmem:[%s2567_s3 + $0xc8] sm:$0xff]  ;;  %v1741_v16 = vld [vmem:[%s2567_s3 + $0xb0] sm:$0xff] }
   0x6   :  { %v1722_v13 = vld [vmem:[%s2567_s3 + $0x1c0] sm:$0xff]  ;;  %116 = vmatpush.msra.mxu0 %v1693_v8  ;;  %v1734_v15 = vld [vmem:[%s2567_s3 + $0x1c8] sm:$0xff]  ;;  %162 = vmatpush.msra.mxu2 %v1705_v10  ;;  %v1746_v17 = vld [vmem:[%s2567_s3 + $0x1b0] sm:$0xff] }
   0x7   :  { %139 = vmatpush.msra.mxu1 %v1700_v9  ;;  %185 = vmatpush.msra.mxu3 %v1710_v11  ;;  %v1753_v18 = vld [vmem:[%s2567_s3 + $0xb8] sm:$0xff]  ;;  %v1765_v20 = vld [vmem:[%s2567_s3 + $0xa0] sm:$0xff]  ;;  %v1777_v22 = vld [vmem:[%s2567_s3 + $0xa8] sm:$0xff] }
   0x8   :  { %117 = vmatpush.msra.mxu0 %v1717_v12  ;;  %v1758_v19 = vld [vmem:[%s2567_s3 + $0x1b8] sm:$0xff]  ;;  %163 = vmatpush.msra.mxu2 %v1729_v14  ;;  %v1770_v21 = vld [vmem:[%s2567_s3 + $0x1a0] sm:$0xff]  ;;  %v1782_v23 = vld [vmem:[%s2567_s3 + $0x1a8] sm:$0xff] }
   0x9   :  { %140 = vmatpush.msra.mxu1 %v1722_v13  ;;  %186 = vmatpush.msra.mxu3 %v1734_v15  ;;  %v1789_v24 = vld [vmem:[%s2567_s3 + $0x90] sm:$0xff]  ;;  %v1801_v26 = vld [vmem:[%s2567_s3 + $0x98] sm:$0xff]  ;;  %v1813_v28 = vld [vmem:[%s2567_s3 + $0x80] sm:$0xff] }
   0xa   :  { %118 = vmatpush.msra.mxu0 %v1741_v16  ;;  %164 = vmatpush.msra.mxu2 %v1753_v18  ;;  %v1794_v25 = vld [vmem:[%s2567_s3 + $0x190] sm:$0xff]  ;;  %v1806_v27 = vld [vmem:[%s2567_s3 + $0x198] sm:$0xff]  ;;  %v1818_v29 = vld [vmem:[%s2567_s3 + $0x180] sm:$0xff] }
   0xb   :  { %141 = vmatpush.msra.mxu1 %v1746_v17  ;;  %187 = vmatpush.msra.mxu3 %v1758_v19  ;;  %v1825_v30 = vld [vmem:[%s2567_s3 + $0x88] sm:$0xff]  ;;  %v1837_v32 = vld [vmem:[%s2567_s3 + $0x70] sm:$0xff]  ;;  %v1849_v34 = vld [vmem:[%s2567_s3 + $0x78] sm:$0xff] }
   0xc   :  { %119 = vmatpush.msra.mxu0 %v1765_v20  ;;  %165 = vmatpush.msra.mxu2 %v1777_v22  ;;  %v1830_v31 = vld [vmem:[%s2567_s3 + $0x188] sm:$0xff]  ;;  %v1842_v33 = vld [vmem:[%s2567_s3 + $0x170] sm:$0xff]  ;;  %v1854_v35 = vld [vmem:[%s2567_s3 + $0x178] sm:$0xff] }
   0xd   :  { %142 = vmatpush.msra.mxu1 %v1770_v21  ;;  %188 = vmatpush.msra.mxu3 %v1782_v23  ;;  %v1861_v36 = vld [vmem:[%s2567_s3 + $0x60] sm:$0xff]  ;;  %v1873_v38 = vld [vmem:[%s2567_s3 + $0x68] sm:$0xff]  ;;  %v1885_v40 = vld [vmem:[%s2567_s3 + $0x50] sm:$0xff] }
   0xe   :  { %120 = vmatpush.msra.mxu0 %v1789_v24  ;;  %166 = vmatpush.msra.mxu2 %v1801_v26  ;;  %v1866_v37 = vld [vmem:[%s2567_s3 + $0x160] sm:$0xff]  ;;  %v1878_v39 = vld [vmem:[%s2567_s3 + $0x168] sm:$0xff]  ;;  %v1890_v41 = vld [vmem:[%s2567_s3 + $0x150] sm:$0xff] }
   0xf   :  { %143 = vmatpush.msra.mxu1 %v1794_v25  ;;  %189 = vmatpush.msra.mxu3 %v1806_v27  ;;  %v1897_v42 = vld [vmem:[%s2567_s3 + $0x58] sm:$0xff]  ;;  %v1909_v44 = vld [vmem:[%s2567_s3 + $0x40] sm:$0xff]  ;;  %v1921_v46 = vld [vmem:[%s2567_s3 + $0x48] sm:$0xff] }
  0x10   :  { %121 = vmatpush.msra.mxu0 %v1813_v28  ;;  %167 = vmatpush.msra.mxu2 %v1825_v30  ;;  %v1902_v43 = vld [vmem:[%s2567_s3 + $0x158] sm:$0xff]  ;;  %v1914_v45 = vld [vmem:[%s2567_s3 + $0x140] sm:$0xff]  ;;  %v1926_v47 = vld [vmem:[%s2567_s3 + $0x148] sm:$0xff] }
  0x11   :  { %144 = vmatpush.msra.mxu1 %v1818_v29  ;;  %190 = vmatpush.msra.mxu3 %v1830_v31  ;;  %v1933_v48 = vld [vmem:[%s2567_s3 + $0x30] sm:$0xff]  ;;  %v1945_v50 = vld [vmem:[%s2567_s3 + $0x38] sm:$0xff]  ;;  %v1957_v52 = vld [vmem:[%s2567_s3 + $0x20] sm:$0xff] }
  0x12   :  { %122 = vmatpush.msra.mxu0 %v1837_v32  ;;  %168 = vmatpush.msra.mxu2 %v1849_v34  ;;  %v1938_v49 = vld [vmem:[%s2567_s3 + $0x130] sm:$0xff]  ;;  %v1950_v51 = vld [vmem:[%s2567_s3 + $0x138] sm:$0xff]  ;;  %v1962_v53 = vld [vmem:[%s2567_s3 + $0x120] sm:$0xff] }
  0x13   :  { %145 = vmatpush.msra.mxu1 %v1842_v33  ;;  %191 = vmatpush.msra.mxu3 %v1854_v35  ;;  %v1969_v54 = vld [vmem:[%s2567_s3 + $0x28] sm:$0xff]  ;;  %v1981_v56 = vld [vmem:[%s2567_s3 + $0x10] sm:$0xff]  ;;  %v1993_v58 = vld [vmem:[%s2567_s3 + $0x18] sm:$0xff] }
  0x14   :  { %123 = vmatpush.msra.mxu0 %v1861_v36  ;;  %169 = vmatpush.msra.mxu2 %v1873_v38  ;;  %v1974_v55 = vld [vmem:[%s2567_s3 + $0x128] sm:$0xff]  ;;  %2583 = vst [vmem:[#allocation3_spill] sm:$0xff] %v1981_v56  ;;  %v1986_v57 = vld [vmem:[%s2567_s3 + $0x110] sm:$0xff]  ;;  %v1998_v59 = vld [vmem:[%s2567_s3 + $0x118] sm:$0xff] }
  0x15   :  { %146 = vmatpush.msra.mxu1 %v1866_v37  ;;  %192 = vmatpush.msra.mxu3 %v1878_v39  ;;  %2584 = vst [vmem:[#allocation4_spill] sm:$0xff] %v1986_v57  ;;  %v2005_v60 = vld [vmem:[%s2567_s3] sm:$0xff]  ;;  %v2017_v62 = vld [vmem:[%s2567_s3 + $0x8] sm:$0xff]  ;;  %vm674_vm11 = vmor %vm656_vm9, %vm673_vm10 }
  0x16   :  { %124 = vmatpush.msra.mxu0 %v1885_v40  ;;  %170 = vmatpush.msra.mxu2 %v1897_v42  ;;  %v2010_v61 = vld [vmem:[%s2567_s3 + $0x100] sm:$0xff]  ;;  %v2022_v63 = vld [vmem:[%s2567_s3 + $0x108] sm:$0xff] }
  0x17   :  { %147 = vmatpush.msra.mxu1 %v1890_v41  ;;  %193 = vmatpush.msra.mxu3 %v1902_v43 }
  0x18   :  { %125 = vmatpush.msra.mxu0 %v1909_v44  ;;  %171 = vmatpush.msra.mxu2 %v1921_v46 }
  0x19   :  { %148 = vmatpush.msra.mxu1 %v1914_v45  ;;  %194 = vmatpush.msra.mxu3 %v1926_v47 }
  0x1a   :  { %126 = vmatpush.msra.mxu0 %v1933_v48  ;;  %172 = vmatpush.msra.mxu2 %v1945_v50 }
  0x1b   :  { %149 = vmatpush.msra.mxu1 %v1938_v49  ;;  %195 = vmatpush.msra.mxu3 %v1950_v51 }
  0x1c   :  { %127 = vmatpush.msra.mxu0 %v1957_v52  ;;  %173 = vmatpush.msra.mxu2 %v1969_v54 }
  0x1d   :  { %150 = vmatpush.msra.mxu1 %v1962_v53  ;;  %196 = vmatpush.msra.mxu3 %v1974_v55 }
  0x1e   :  { %128 = vmatpush.msra.mxu0 %v1981_v56  ;;  %174 = vmatpush.msra.mxu2 %v1993_v58  ;;  %v2038_v56 = vld [vmem:[%s2568_s0 + $0x8] sm:$0xff] }
  0x1f   :  { %151 = vmatpush.msra.mxu1 %v1986_v57  ;;  %197 = vmatpush.msra.mxu3 %v1998_v59  ;;  %v2033_v57 = vld [vmem:[%s2568_s0] sm:$0xff] }
  0x20   :  { %129 = vmatpush.msra.mxu0 %v2005_v60  ;;  %175 = vmatpush.msra.mxu2 %v2017_v62 }
  0x21   :  { %152 = vmatpush.msra.mxu1 %v2010_v61  ;;  %198 = vmatpush.msra.mxu3 %v2022_v63 }
  0x22   :  { %210 = vmatpush.msrb.mxu0 %v1649_v0  ;;  %256 = vmatpush.msrb.mxu2 %v1659_v2  ;;  %v2063_v0 = vld [vmem:[%s2568_s0 + $0x10] sm:$0xff] }
  0x23   :  { %233 = vmatpush.msrb.mxu1 %v1654_v1  ;;  %279 = vmatpush.msrb.mxu3 %v1666_v3  ;;  %v2068_v1 = vld [vmem:[%s2568_s0 + $0x18] sm:$0xff]  ;;  %v2585_v2 = vld [vmem:[#allocation3_spill] sm:$0xff] }
  0x24   :  { %176 = vmatmul.f32.vlgmr.msra.gmra.mxu2 %v2033_v57  ;;  %199 = vmatmul.f32.vlgmr.msra.gmra.mxu3 %v2038_v56  ;;  %v2586_v3 = vld [vmem:[#allocation4_spill] sm:$0xff] }
  0x25   :  { %211 = vmatpush.msrb.mxu0 %v1671_v4  ;;  %234 = vmatpush.msrb.mxu1 %v1676_v5  ;;  %v206_v4 = vmul.f32 %v2033_v57, %v2033_v57  ;;  %v207_v5 = vmul.f32 %v2038_v56, %v2038_v56 }
  0x26   :  { %257 = vmatpush.msrb.mxu2 %v1683_v6  ;;  %280 = vmatpush.msrb.mxu3 %v1688_v7  ;;  %v208_v6 = vmul.f32 %v2063_v0, %v2063_v0  ;;  %v209_v7 = vmul.f32 %v2068_v1, %v2068_v1 }
  0x27   :  { %212 = vmatpush.msrb.mxu0 %v1693_v8  ;;  %235 = vmatpush.msrb.mxu1 %v1700_v9 }
  0x28   :  { %258 = vmatpush.msrb.mxu2 %v1705_v10  ;;  %281 = vmatpush.msrb.mxu3 %v1710_v11 }
  0x29   :  { %213 = vmatpush.msrb.mxu0 %v1717_v12  ;;  %236 = vmatpush.msrb.mxu1 %v1722_v13 }
  0x2a   :  { %259 = vmatpush.msrb.mxu2 %v1729_v14  ;;  %282 = vmatpush.msrb.mxu3 %v1734_v15 }
  0x2b   :  { %130 = vmatmul.f32.vlgmr.msra.gmra.mxu0 %v2033_v57  ;;  %153 = vmatmul.f32.vlgmr.msra.gmra.mxu1 %v2038_v56 }
  0x2c   :  { %214 = vmatpush.msrb.mxu0 %v1741_v16  ;;  %237 = vmatpush.msrb.mxu1 %v1746_v17  ;;  %v1515_v16 = vld [vmem:[%s2569_s4 + $0x38] sm:$0xff] }
  0x2d   :  { %260 = vmatpush.msrb.mxu2 %v1753_v18  ;;  %283 = vmatpush.msrb.mxu3 %v1758_v19 }
  0x2e   :  { %179 = vmatmul.f32.gmra.mxu2 %v2063_v0  ;;  %202 = vmatmul.f32.gmra.mxu3 %v2068_v1 }
  0x2f   :  { %215 = vmatpush.msrb.mxu0 %v1765_v20  ;;  %238 = vmatpush.msrb.mxu1 %v1770_v21  ;;  %v1514_v20 = vld [vmem:[%s2569_s4 + $0x30] sm:$0xff] }
  0x30   :  { %261 = vmatpush.msrb.mxu2 %v1777_v22  ;;  %284 = vmatpush.msrb.mxu3 %v1782_v23 }
  0x31   :  { %216 = vmatpush.msrb.mxu0 %v1789_v24  ;;  %239 = vmatpush.msrb.mxu1 %v1794_v25  ;;  %v1523_v24 = vld [vmem:[%s2569_s4 + $0x78] sm:$0xff] }
  0x32   :  { %262 = vmatpush.msrb.mxu2 %v1801_v26  ;;  %285 = vmatpush.msrb.mxu3 %v1806_v27  ;;  %v1513_v27 = vld [vmem:[%s2569_s4 + $0x28] sm:$0xff] }
  0x33   :  { %217 = vmatpush.msrb.mxu0 %v1813_v28  ;;  %240 = vmatpush.msrb.mxu1 %v1818_v29 }
  0x34   :  { %263 = vmatpush.msrb.mxu2 %v1825_v30  ;;  %286 = vmatpush.msrb.mxu3 %v1830_v31  ;;  %v1522_v30 = vld [vmem:[%s2569_s4 + $0x70] sm:$0xff]  ;;  %v1512_v31 = vld [vmem:[%s2569_s4 + $0x20] sm:$0xff] }
  0x35   :  { %133 = vmatmul.f32.gmra.mxu0 %v2063_v0  ;;  %156 = vmatmul.f32.gmra.mxu1 %v2068_v1 }
  0x36   :  { %218 = vmatpush.msrb.mxu0 %v1837_v32  ;;  %241 = vmatpush.msrb.mxu1 %v1842_v33 }
  0x37   :  { %264 = vmatpush.msrb.mxu2 %v1849_v34  ;;  %287 = vmatpush.msrb.mxu3 %v1854_v35 }
  0x38   :  { %219 = vmatpush.msrb.mxu0 %v1861_v36  ;;  %242 = vmatpush.msrb.mxu1 %v1866_v37  ;;  %v1521_v36 = vld [vmem:[%s2569_s4 + $0x68] sm:$0xff] }
  0x39   :  { %265 = vmatpush.msrb.mxu2 %v1873_v38  ;;  %288 = vmatpush.msrb.mxu3 %v1878_v39 }
  0x3a   :  { %220 = vmatpush.msrb.mxu0 %v1885_v40  ;;  %243 = vmatpush.msrb.mxu1 %v1890_v41  ;;  %v1511_v41 = vld [vmem:[%s2569_s4 + $0x18] sm:$0xff] }
  0x3b   :  { %266 = vmatpush.msrb.mxu2 %v1897_v42  ;;  %289 = vmatpush.msrb.mxu3 %v1902_v43 }
  0x3c   :  { %221 = vmatpush.msrb.mxu0 %v1909_v44  ;;  %244 = vmatpush.msrb.mxu1 %v1914_v45  ;;  %v1520_v45 = vld [vmem:[%s2569_s4 + $0x60] sm:$0xff] }
  0x3d   :  { %267 = vmatpush.msrb.mxu2 %v1921_v46  ;;  %290 = vmatpush.msrb.mxu3 %v1926_v47  ;;  %v1510_v47 = vld [vmem:[%s2569_s4 + $0x10] sm:$0xff] }
  0x3e   :  { %222 = vmatpush.msrb.mxu0 %v1933_v48  ;;  %245 = vmatpush.msrb.mxu1 %v1938_v49 }
  0x3f   :  { %268 = vmatpush.msrb.mxu2 %v1945_v50  ;;  %291 = vmatpush.msrb.mxu3 %v1950_v51 }
  0x40   :  { %223 = vmatpush.msrb.mxu0 %v1957_v52  ;;  %246 = vmatpush.msrb.mxu1 %v1962_v53  ;;  %v1519_v53 = vld [vmem:[%s2569_s4 + $0x58] sm:$0xff] }
  0x41   :  { %269 = vmatpush.msrb.mxu2 %v1969_v54  ;;  %292 = vmatpush.msrb.mxu3 %v1974_v55 }
  0x42   :  { %224 = vmatpush.msrb.mxu0 %v2585_v2  ;;  %247 = vmatpush.msrb.mxu1 %v2586_v3  ;;  %v1508_v3 = vld [vmem:[%s2569_s4] sm:$0xff] }
  0x43   :  { %270 = vmatpush.msrb.mxu2 %v1993_v58  ;;  %293 = vmatpush.msrb.mxu3 %v1998_v59  ;;  %v1509_v59 = vld [vmem:[%s2569_s4 + $0x8] sm:$0xff] }
  0x44   :  { %225 = vmatpush.msrb.mxu0 %v2005_v60  ;;  %248 = vmatpush.msrb.mxu1 %v2010_v61  ;;  %v1518_v60 = vld [vmem:[%s2569_s4 + $0x50] sm:$0xff] }
  0x45   :  { %271 = vmatpush.msrb.mxu2 %v2017_v62  ;;  %294 = vmatpush.msrb.mxu3 %v2022_v63 }
  0x46   :  { %226 = vmatmul.f32.vlgmr.msrb.gmra.mxu0 %v206_v4  ;;  %249 = vmatmul.f32.vlgmr.msrb.gmra.mxu1 %v207_v5 }
  0x47   :  { %272 = vmatmul.f32.vlgmr.msrb.gmra.mxu2 %v206_v4  ;;  %295 = vmatmul.f32.vlgmr.msrb.gmra.mxu3 %v207_v5 }
  0x48   :  { %516 = vmatpush.bf16.msra.mxu0 %v1515_v16  ;;  %530 = vmatpush.bf16.msra.mxu1 %v1523_v24  ;;  %v559_v24 = vld [vmem:[%s2570_s7 + $0x68] sm:$0xff] }
  0x4c   :  { %517 = vmatpush.bf16.msra.mxu0 %v1514_v20  ;;  %531 = vmatpush.bf16.msra.mxu1 %v1522_v30 }
  0x4e   :  { %229 = vmatmul.f32.gmra.mxu0 %v208_v6  ;;  %252 = vmatmul.f32.gmra.mxu1 %v209_v7 }
  0x4f   :  { %275 = vmatmul.f32.gmra.mxu2 %v208_v6  ;;  %298 = vmatmul.f32.gmra.mxu3 %v209_v7  ;;  %v1517_v6 = vld [vmem:[%s2569_s4 + $0x48] sm:$0xff] }
  0x50   :  { %518 = vmatpush.bf16.msra.mxu0 %v1513_v27  ;;  %532 = vmatpush.bf16.msra.mxu1 %v1521_v36  ;;  %v558_v27 = vld [vmem:[%s2570_s7 + $0x60] sm:$0xff] }
  0x54   :  { %519 = vmatpush.bf16.msra.mxu0 %v1512_v31  ;;  %533 = vmatpush.bf16.msra.mxu1 %v1520_v45  ;;  %v556_v31 = vld [vmem:[%s2570_s7 + $0x50] sm:$0xff]  ;;  %v553_v45 = vld [vmem:[%s2570_s7 + $0x38] sm:$0xff] }
  0x58   :  { %520 = vmatpush.bf16.msra.mxu0 %v1511_v41  ;;  %534 = vmatpush.bf16.msra.mxu1 %v1519_v53 }
  0x5c   :  { %521 = vmatpush.bf16.msra.mxu0 %v1510_v47  ;;  %535 = vmatpush.bf16.msra.mxu1 %v1518_v60 }
  0x60   :  { %522 = vmatpush.bf16.msra.mxu0 %v1509_v59  ;;  %536 = vmatpush.bf16.msra.mxu1 %v1517_v6 }
  0x64   :  { %523 = vmatpush.bf16.msra.mxu0 %v1508_v3 }
  0xa7   :  { %v177_v10 = vpop.f32.mrf.mxu2  ;;  %v200_v11 = vpop.f32.mrf.mxu3 }
  0xa8   :  { %v131_v8 = vpop.f32.mrf.mxu0  ;;  %v154_v9 = vpop.f32.mrf.mxu1  ;;  %v201_v21 = vadd.f32 %v200_v11, %v177_v10 }
  0xa9   :  { %v155_v14 = vadd.f32 %v154_v9, %v131_v8 }
  0xb1   :  { %v180_v18 = vpop.f32.mrf.mxu2  ;;  %v203_v19 = vpop.f32.mrf.mxu3 }
  0xb2   :  { %v134_v12 = vpop.f32.mrf.mxu0  ;;  %v157_v13 = vpop.f32.mrf.mxu1  ;;  %v204_v22 = vadd.f32 %v203_v19, %v180_v18 }
  0xb3   :  { %v158_v15 = vadd.f32 %v157_v13, %v134_v12  ;;  %v1516_v13 = vld [vmem:[%s2569_s4 + $0x40] sm:$0xff] }
  0xb4   :  { %v309_v28 = vadd.f32 %v204_v22, %v201_v21  ;;  %537 = vmatpush.bf16.msra.mxu1 %v1516_v13  ;;  %v561_v21 = vld [vmem:[%s2570_s7 + $0x78] sm:$0xff]  ;;  %v560_v22 = vld [vmem:[%s2570_s7 + $0x70] sm:$0xff] }
  0xb5   :  { %v302_v17 = vadd.f32 %v158_v15, %v155_v14  ;;  %562 = vmatpush.msra.mxu2 %v561_v21  ;;  %587 = vmatpush.msra.mxu3 %v561_v21  ;;  %v548_v13 = vld [vmem:[%s2570_s7 + $0x10] sm:$0xff] }
  0xb6   :  { %v310_v32 = vrot.slane %v309_v28, 4 }
  0xb7   :  { %v303_v23 = vrot.slane %v302_v17, 4  ;;  %563 = vmatpush.msra.mxu2 %v560_v22  ;;  %588 = vmatpush.msra.mxu3 %v560_v22 }
  0xb8   :  { %v311_v42 = vadd.f32 %v310_v32, %v309_v28 }
  0xb9   :  { %v304_v29 = vadd.f32 %v303_v23, %v302_v17  ;;  %564 = vmatpush.msra.mxu2 %v559_v24  ;;  %589 = vmatpush.msra.mxu3 %v559_v24  ;;  %v2266_v24 = vld [vmem:[%s2575_s8 + $0x38] sm:$0xff] }
  0xba   :  { %v312_v48 = vrot.slane %v311_v42, 2  ;;  %840 = vmatpush.bf16.msrb.mxu1 %v2266_v24 }
  0xbb   :  { %v305_v33 = vrot.slane %v304_v29, 2  ;;  %565 = vmatpush.msra.mxu2 %v558_v27  ;;  %590 = vmatpush.msra.mxu3 %v558_v27 }
  0xbc   :  { %v313_v61 = vadd.f32 %v312_v48, %v311_v42 }
  0xbd   :  { %v306_v43 = vadd.f32 %v305_v33, %v304_v29  ;;  %v557_v29 = vld [vmem:[%s2570_s7 + $0x58] sm:$0xff] }
  0xbe   :  { %v314_v7 = vrot.slane %v313_v61, 1  ;;  %566 = vmatpush.msra.mxu2 %v557_v29  ;;  %591 = vmatpush.msra.mxu3 %v557_v29 }
  0xbf   :  { %v307_v49 = vrot.slane %v306_v43, 1 }
  0xc0   :  { %v2182_v14 = vadd.f32 %v314_v7, %v313_v61  ;;  %567 = vmatpush.msra.mxu2 %v556_v31  ;;  %592 = vmatpush.msra.mxu3 %v556_v31  ;;  %v1538_v31 = vld [vmem:[%s2575_s8 + $0x70] sm:$0xff] }
  0xc1   :  { %v2169_v63 = vadd.f32 %v307_v49, %v306_v43 }
  0xc2   :  { %v331_v19 = vmul.f32 %v2182_v14, %v2182_v14  ;;  %v337_v59 = vsub.f32 %v2068_v1, %v2182_v14  ;;  %v550_v1 = vld [vmem:[%s2570_s7 + $0x20] sm:$0xff] }
  0xc3   :  { %v227_v25 = vpop.f32.mrf.mxu0  ;;  %v250_v26 = vpop.f32.mrf.mxu1  ;;  %v330_v10 = vmul.f32 %v2169_v63, %v2169_v63  ;;  %v336_v41 = vsub.f32 %v2063_v0, %v2169_v63 }
  0xc4   :  { %v251_v39 = vadd.f32 %v250_v26, %v227_v25 }
  0xca   :  { %v273_v34 = vpop.f32.mrf.mxu2  ;;  %v296_v35 = vpop.f32.mrf.mxu3 }
  0xcb   :  { %v230_v37 = vpop.f32.mrf.mxu0  ;;  %v253_v38 = vpop.f32.mrf.mxu1  ;;  %v297_v54 = vadd.f32 %v296_v35, %v273_v34  ;;  %v48_v34 = vld [vmem:[%s2571_s1] sm:$0x3]  ;;  %v555_v35 = vld [vmem:[%s2570_s7 + $0x48] sm:$0xff] }
  0xcc   :  { %v254_v40 = vadd.f32 %v253_v38, %v230_v37  ;;  %v49_v37 = vld [vmem:[%s2572_s2] sm:$0x3]  ;;  %v365_v43 = vperm.slane %v48_v34, 0  ;;  %568 = vmatpush.msra.mxu2 %v555_v35  ;;  %593 = vmatpush.msra.mxu3 %v555_v35  ;;  %v366_v60 = vperm.slane %v48_v34, 1  ;;  %v1537_v35 = vld [vmem:[%s2575_s8 + $0x68] sm:$0xff] }
  0xcd   :  { %v374_v49 = vperm.slane %v49_v37, 0 }
  0xce   :  { %v316_v44 = vadd.f32 %v254_v40, %v251_v39  ;;  %v554_v39 = vld [vmem:[%s2570_s7 + $0x40] sm:$0xff]  ;;  %v334_v40 = vsub.f32 %v2033_v57, %v2169_v63  ;;  %v552_v57 = vld [vmem:[%s2570_s7 + $0x30] sm:$0xff] }
  0xcf   :  { %569 = vmatpush.msra.mxu2 %v554_v39  ;;  %594 = vmatpush.msra.mxu3 %v554_v39 }
  0xd0   :  { %v317_v46 = vrot.slane %v316_v44, 4 }
  0xd1   :  { %570 = vmatpush.msra.mxu2 %v553_v45  ;;  %595 = vmatpush.msra.mxu3 %v553_v45 }
  0xd2   :  { %v318_v50 = vadd.f32 %v317_v46, %v316_v44  ;;  %v276_v51 = vpop.f32.mrf.mxu2  ;;  %v299_v52 = vpop.f32.mrf.mxu3 }
  0xd3   :  { %v300_v55 = vadd.f32 %v299_v52, %v276_v51  ;;  %v551_v52 = vld [vmem:[%s2570_s7 + $0x28] sm:$0xff]  ;;  %571 = vmatpush.msra.mxu2 %v552_v57  ;;  %596 = vmatpush.msra.mxu3 %v552_v57  ;;  %v1535_v57 = vld [vmem:[%s2575_s8 + $0x58] sm:$0xff] }
  0xd4   :  { %v319_v58 = vrot.slane %v318_v50, 2 }
  0xd5   :  { %v323_v62 = vadd.f32 %v300_v55, %v297_v54  ;;  %572 = vmatpush.msra.mxu2 %v551_v52  ;;  %597 = vmatpush.msra.mxu3 %v551_v52  ;;  %v2332_v52 = vld [vmem:[%s2575_s8] sm:$0xff] }
  0xd6   :  { %v320_v2 = vadd.f32 %v319_v58, %v318_v50  ;;  %v335_v58 = vsub.f32 %v2038_v56, %v2182_v14  ;;  %v547_v14 = vld [vmem:[%s2570_s7 + $0x8] sm:$0xff] }
  0xd7   :  { %v324_v4 = vrot.slane %v323_v62, 4  ;;  %573 = vmatpush.msra.mxu2 %v550_v1  ;;  %598 = vmatpush.msra.mxu3 %v550_v1 }
  0xd8   :  { %v321_v5 = vrot.slane %v320_v2, 1 }
  0xd9   :  { %v325_v8 = vadd.f32 %v324_v4, %v323_v62  ;;  %v375_v4 = vperm.slane %v49_v37, 1  ;;  %v1547_v37 = vld [vmem:[%s2575_s8 + $0xb8] sm:$0xff] }
  0xda   :  { %v322_v9 = vadd.f32 %v321_v5, %v320_v2 }
  0xdb   :  { %v326_v11 = vrot.slane %v325_v8, 2 }
  0xdc   :  { %v332_v12 = vsub.f32 %v322_v9, %v330_v10 }
  0xdd   :  { %v327_v15 = vadd.f32 %v326_v11, %v325_v8 }
  0xde   :  { %v338_v16 = vadd.f32 1e-05, %v332_v12  ;;  %v549_v12 = vld [vmem:[%s2570_s7 + $0x18] sm:$0xff] }
  0xdf   :  { %v328_v17 = vrot.slane %v327_v15, 1  ;;  %574 = vmatpush.msra.mxu2 %v549_v12  ;;  %599 = vmatpush.msra.mxu3 %v549_v12 }
  0xe0   :  { %1568 = vrsqrt.f32 %v338_v16  ;;  %vm346_vm1 = vweird.f32 %v338_v16 }
  0xe1   :  { %v329_v18 = vadd.f32 %v328_v17, %v327_v15  ;;  %575 = vmatpush.msra.mxu2 %v548_v13  ;;  %600 = vmatpush.msra.mxu3 %v548_v13  ;;  %v546_v15 = vld [vmem:[%s2570_s7] sm:$0xff] }
  0xe2   :  { %v1564_v13 = vld [vmem:[%s2573_s5] ss:$0 sm:$0xff] }
  0xe3   :  { %v333_v20 = vsub.f32 %v329_v18, %v331_v19  ;;  %576 = vmatpush.msra.mxu2 %v547_v14  ;;  %601 = vmatpush.msra.mxu3 %v547_v14 }
  0xe5   :  { %v2192_v23 = vadd.f32 1e-05, %v333_v20  ;;  %577 = vmatpush.msra.mxu2 %v546_v15  ;;  %602 = vmatpush.msra.mxu3 %v546_v15 }
  0xe6   :  { %v1569_v25 = vpop.eup %1568 }
  0xe7   :  { %v341_v26 = vmul.f32 %v1569_v25, %v338_v16  ;;  %1570 = vrsqrt.f32 %v2192_v23  ;;  %vm347_vm0 = vweird.f32 %v1569_v25  ;;  %vm356_vm4 = vweird.f32 %v2192_v23  ;;  %924 = vmatpush.bf16.msrb.mxu2 %v1547_v37 }
  0xe8   :  { %vm348_vm2 = vmor %vm346_vm1, %vm347_vm0 }
  0xe9   :  { %v342_v28 = vmul.f32 %v1569_v25, %v341_v26  ;;  %v2278_v26 = vld [vmem:[%s2575_s8 + $0x28] sm:$0xff] }
  0xeb   :  { %v343_v30 = vmul.f32 0.5, %v342_v28  ;;  %v1539_v28 = vld [vmem:[%s2575_s8 + $0x78] sm:$0xff] }
  0xec   :  { %779 = vmatpush.bf16.msrb.mxu0 %v1539_v28  ;;  %955 = vmatpush.bf16.msrb.mxu3 %v1539_v28 }
  0xed   :  { %v1571_v32 = vpop.eup %1570  ;;  %v344_v33 = vsub.f32 1.5, %v343_v30  ;;  %v2287_v30 = vld [vmem:[%s2575_s8 + $0x20] sm:$0xff] }
  0xee   :  { %v351_v36 = vmul.f32 %v1571_v32, %v2192_v23  ;;  %vm357_vm3 = vweird.f32 %v1571_v32 }
  0xef   :  { %v345_v38 = vmul.f32 %v1569_v25, %v344_v33  ;;  %vm358_vm5 = vmor %vm356_vm4, %vm357_vm3 }
  0xf0   :  { %v352_v42 = vmul.f32 %v1571_v32, %v351_v36  ;;  %780 = vmatpush.bf16.msrb.mxu0 %v1538_v31  ;;  %956 = vmatpush.bf16.msrb.mxu3 %v1538_v31 }
  0xf1   :  { %v349_v44 = vsel %vm348_vm2, %v1569_v25, %v345_v38  ;;  %v2272_v25 = vld [vmem:[%s2575_s8 + $0x30] sm:$0xff] }
  0xf2   :  { %v353_v46 = vmul.f32 0.5, %v352_v42  ;;  %v360_v47 = vmul.f32 %v349_v44, %v334_v40  ;;  %v362_v48 = vmul.f32 %v349_v44, %v336_v41  ;;  %841 = vmatpush.bf16.msrb.mxu1 %v2272_v25  ;;  %v2308_v40 = vld [vmem:[%s2575_s8 + $0x10] sm:$0xff] }
  0xf3   :  { %v1546_v44 = vld [vmem:[%s2575_s8 + $0xb0] sm:$0xff] }
  0xf4   :  { %v354_v0 = vsub.f32 1.5, %v353_v46  ;;  %v369_v50 = vmul.f32 %v365_v43, %v360_v47  ;;  %v371_v51 = vmul.f32 %v365_v43, %v362_v48  ;;  %781 = vmatpush.bf16.msrb.mxu0 %v1537_v35  ;;  %957 = vmatpush.bf16.msrb.mxu3 %v1537_v35  ;;  %v1536_v43 = vld [vmem:[%s2575_s8 + $0x60] sm:$0xff]  ;;  %v2320_v47 = vld [vmem:[%s2575_s8 + $0x8] sm:$0xff] }
  0xf5   :  { %925 = vmatpush.bf16.msrb.mxu2 %v1546_v44 }
  0xf6   :  { %v378_v53 = vadd.f32 %v374_v49, %v369_v50  ;;  %v380_v54 = vadd.f32 %v374_v49, %v371_v51  ;;  %v355_v55 = vmul.f32 %v1571_v32, %v354_v0  ;;  %842 = vmatpush.bf16.msrb.mxu1 %v2278_v26  ;;  %v1545_v0 = vld [vmem:[%s2575_s8 + $0xa8] sm:$0xff] }
  0xf8   :  { %v382_v61 = vmax.f32 %v378_v53, 0.0  ;;  %v384_v62 = vmax.f32 %v380_v54, 0.0  ;;  %v359_v63 = vsel %vm358_vm5, %v1571_v32, %v355_v55  ;;  %v2296_v32 = vld [vmem:[%s2575_s8 + $0x18] sm:$0xff]  ;;  %782 = vmatpush.bf16.msrb.mxu0 %v1536_v43  ;;  %958 = vmatpush.bf16.msrb.mxu3 %v1536_v43  ;;  %v1534_v55 = vld [vmem:[%s2575_s8 + $0x50] sm:$0xff]  ;;  %v1020_v43 = vld [vmem:[%s2576_s11 + $0x60] sm:$0xff] }
  0xf9   :  { %v361_v2 = vmul.f32 %v359_v63, %v335_v58  ;;  %v363_v3 = vmul.f32 %v359_v63, %v337_v59  ;;  %926 = vmatpush.bf16.msrb.mxu2 %v1545_v0  ;;  %v1544_v58 = vld [vmem:[%s2575_s8 + $0xa0] sm:$0xff]  ;;  %v1543_v63 = vld [vmem:[%s2575_s8 + $0x98] sm:$0xff] }
  0xfa   :  { %v386_v5 = vpack.c.bf16 %v384_v62, %v382_v61  ;;  %843 = vmatpush.bf16.msrb.mxu1 %v2287_v30  ;;  %v1533_v62 = vld [vmem:[%s2575_s8 + $0x48] sm:$0xff] }
  0xfb   :  { %v370_v6 = vmul.f32 %v366_v60, %v361_v2  ;;  %v372_v7 = vmul.f32 %v366_v60, %v363_v3  ;;  %v1532_v3 = vld [vmem:[%s2575_s8 + $0x40] sm:$0xff] }
  0xfc   :  { %524 = vmatmul.bf16.vlgmr.msra.gmra.mxu0 %v386_v5  ;;  %959 = vmatpush.bf16.msrb.mxu3 %v1535_v57  ;;  %v1541_v5 = vld [vmem:[%s2575_s8 + $0x88] sm:$0xff] }
  0xfd   :  { %v379_v8 = vadd.f32 %v375_v4, %v370_v6  ;;  %v381_v9 = vadd.f32 %v375_v4, %v372_v7  ;;  %783 = vmatpush.bf16.msrb.mxu0 %v1535_v57  ;;  %927 = vmatpush.bf16.msrb.mxu2 %v1544_v58  ;;  %v1542_v4 = vld [vmem:[%s2575_s8 + $0x90] sm:$0xff] }
  0xfe   :  { %844 = vmatpush.bf16.msrb.mxu1 %v2296_v32 }
  0xff   :  { %v383_v56 = vmax.f32 %v379_v8, 0.0  ;;  %v385_v10 = vmax.f32 %v381_v9, 0.0  ;;  %v1540_v9 = vld [vmem:[%s2575_s8 + $0x80] sm:$0xff] }
 0x100   :  { %960 = vmatpush.bf16.msrb.mxu3 %v1534_v55 }
 0x101   :  { %v387_v11 = vpack.c.bf16 %v385_v10, %v383_v56  ;;  %784 = vmatpush.bf16.msrb.mxu0 %v1534_v55  ;;  %928 = vmatpush.bf16.msrb.mxu2 %v1543_v63 }
 0x102   :  { %845 = vmatpush.bf16.msrb.mxu1 %v2308_v40 }
 0x103   :  { %538 = vmatmul.bf16.vlgmr.msra.gmra.mxu1 %v387_v11 }
 0x104   :  { %961 = vmatpush.bf16.msrb.mxu3 %v1533_v62 }
 0x105   :  { %785 = vmatpush.bf16.msrb.mxu0 %v1533_v62  ;;  %929 = vmatpush.bf16.msrb.mxu2 %v1542_v4 }
 0x106   :  { %846 = vmatpush.bf16.msrb.mxu1 %v2320_v47 }
 0x108   :  { %962 = vmatpush.bf16.msrb.mxu3 %v1532_v3 }
 0x109   :  { %786 = vmatpush.bf16.msrb.mxu0 %v1532_v3  ;;  %930 = vmatpush.bf16.msrb.mxu2 %v1541_v5 }
 0x10a   :  { %847 = vmatpush.bf16.msrb.mxu1 %v2332_v52 }
 0x10d   :  { %973 = vmatpush.bf16.msra.mxu0 %v2266_v24  ;;  %931 = vmatpush.bf16.msrb.mxu2 %v1540_v9 }
 0x10e   :  { %992 = vmatpush.bf16.msra.mxu1 %v1547_v37  ;;  %v1023_v37 = vld [vmem:[%s2576_s11 + $0x78] sm:$0xff] }
 0x111   :  { %974 = vmatpush.bf16.msra.mxu0 %v2272_v25 }
 0x112   :  { %993 = vmatpush.bf16.msra.mxu1 %v1546_v44 }
 0x115   :  { %975 = vmatpush.bf16.msra.mxu0 %v2278_v26 }
 0x116   :  { %994 = vmatpush.bf16.msra.mxu1 %v1545_v0 }
 0x119   :  { %976 = vmatpush.bf16.msra.mxu0 %v2287_v30 }
 0x11a   :  { %995 = vmatpush.bf16.msra.mxu1 %v1544_v58 }
 0x11d   :  { %977 = vmatpush.bf16.msra.mxu0 %v2296_v32 }
 0x11e   :  { %996 = vmatpush.bf16.msra.mxu1 %v1543_v63  ;;  %v1016_v63 = vld [vmem:[%s2576_s11 + $0x40] sm:$0xff] }
 0x121   :  { %978 = vmatpush.bf16.msra.mxu0 %v2308_v40  ;;  %v1021_v40 = vld [vmem:[%s2576_s11 + $0x68] sm:$0xff] }
 0x122   :  { %997 = vmatpush.bf16.msra.mxu1 %v1542_v4 }
 0x125   :  { %979 = vmatpush.bf16.msra.mxu0 %v2320_v47 }
 0x126   :  { %998 = vmatpush.bf16.msra.mxu1 %v1541_v5 }
 0x129   :  { %980 = vmatpush.bf16.msra.mxu0 %v2332_v52 }
 0x12a   :  { %999 = vmatpush.bf16.msra.mxu1 %v1540_v9 }
 0x179   :  { %v525_v16 = vpop.f32.mrf.mxu0 }
 0x180   :  { %v539_v17 = vpop.f32.mrf.mxu1 }
 0x181   :  { %v2253_v18 = vadd.f32 %v539_v17, %v525_v16  ;;  %v527_v20 = vpop.f32.mrf.mxu0  ;;  %v1565_v17 = vld [vmem:[%s2574_s6] ss:$0 sm:$0xff] }
 0x183   :  { %v585_v19 = vmul.f32 %v2253_v18, %v2253_v18  ;;  %578 = vmatmul.f32.vlgmr.msra.gmra.mxu2 %v2253_v18 }
 0x184   :  { %1024 = vmatpush.msra.mxu2 %v1023_v37 }
 0x185   :  { %603 = vmatmul.f32.vlgmr.msra.gmra.mxu3 %v585_v19 }
 0x186   :  { %1049 = vmatpush.msra.mxu3 %v1023_v37 }
 0x188   :  { %v541_v21 = vpop.f32.mrf.mxu1 }
 0x189   :  { %v2258_v22 = vadd.f32 %v541_v21, %v527_v20 }
 0x18b   :  { %581 = vmatmul.f32.gmra.mxu2 %v2258_v22  ;;  %v586_v23 = vmul.f32 %v2258_v22, %v2258_v22 }
 0x18d   :  { %606 = vmatmul.f32.gmra.mxu3 %v586_v23 }
 0x206   :  { %v579_v27 = vpop.f32.mrf.mxu2 }
 0x208   :  { %v604_v29 = vpop.f32.mrf.mxu3 }
 0x20e   :  { %v582_v33 = vpop.f32.mrf.mxu2 }
 0x20f   :  { %v610_v34 = vadd.f32 %v582_v33, %v579_v27 }
 0x210   :  { %v607_v36 = vpop.f32.mrf.mxu3 }
 0x211   :  { %v611_v38 = vrot.slane %v610_v34, 4  ;;  %v617_v39 = vadd.f32 %v607_v36, %v604_v29 }
 0x213   :  { %v612_v41 = vadd.f32 %v611_v38, %v610_v34  ;;  %v618_v42 = vrot.slane %v617_v39, 4  ;;  %v1022_v38 = vld [vmem:[%s2576_s11 + $0x70] sm:$0xff] }
 0x214   :  { %1025 = vmatpush.msra.mxu2 %v1022_v38  ;;  %1050 = vmatpush.msra.mxu3 %v1022_v38 }
 0x215   :  { %v613_v45 = vrot.slane %v612_v41, 2  ;;  %v619_v46 = vadd.f32 %v618_v42, %v617_v39 }
 0x216   :  { %1026 = vmatpush.msra.mxu2 %v1021_v40  ;;  %1051 = vmatpush.msra.mxu3 %v1021_v40  ;;  %v1563_v40 = vld [vmem:[%s2579_s12 + $0x74] sm:$0xf0] }
 0x217   :  { %v614_v48 = vadd.f32 %v613_v45, %v612_v41  ;;  %v620_v49 = vrot.slane %v619_v46, 2 }
 0x218   :  { %1027 = vmatpush.msra.mxu2 %v1020_v43  ;;  %1052 = vmatpush.msra.mxu3 %v1020_v43  ;;  %v1504_v43 = vld [vmem:[%s2579_s12 + $0x78] sm:$0xf0] }
 0x219   :  { %v615_v50 = vrot.slane %v614_v48, 1  ;;  %v621_v51 = vadd.f32 %v620_v49, %v619_v46 }
 0x21b   :  { %v616_v53 = vadd.f32 %v615_v50, %v614_v48  ;;  %v622_v54 = vrot.slane %v621_v51, 1  ;;  %v1019_v48 = vld [vmem:[%s2576_s11 + $0x58] sm:$0xff]  ;;  %v1018_v50 = vld [vmem:[%s2576_s11 + $0x50] sm:$0xff] }
 0x21c   :  { %1028 = vmatpush.msra.mxu2 %v1019_v48  ;;  %1053 = vmatpush.msra.mxu3 %v1019_v48 }
 0x21d   :  { %v623_v59 = vadd.f32 %v622_v54, %v621_v51  ;;  %v624_v60 = vmul.f32 %v616_v53, %v616_v53  ;;  %v626_v1 = vsub.f32 %v2253_v18, %v616_v53  ;;  %v627_v12 = vsub.f32 %v2258_v22, %v616_v53 }
 0x21e   :  { %1029 = vmatpush.msra.mxu2 %v1018_v50  ;;  %1054 = vmatpush.msra.mxu3 %v1018_v50  ;;  %v1559_v50 = vld [vmem:[%s2579_s12 + $0x54] sm:$0xf0] }
 0x21f   :  { %v625_v61 = vsub.f32 %v623_v59, %v624_v60  ;;  %v1017_v59 = vld [vmem:[%s2576_s11 + $0x48] sm:$0xff] }
 0x220   :  { %1030 = vmatpush.msra.mxu2 %v1017_v59  ;;  %1055 = vmatpush.msra.mxu3 %v1017_v59  ;;  %v1478_v59 = vld [vmem:[%s2579_s12 + $0x40] sm:$0xf] }
 0x221   :  { %v628_v2 = vadd.f32 1e-05, %v625_v61 }
 0x222   :  { %1031 = vmatpush.msra.mxu2 %v1016_v63  ;;  %1056 = vmatpush.msra.mxu3 %v1016_v63  ;;  %v1480_v63 = vld [vmem:[%s2579_s12 + $0x48] sm:$0xf0] }
 0x223   :  { %1572 = vrsqrt.f32 %v628_v2  ;;  %vm635_vm7 = vweird.f32 %v628_v2 }
 0x229   :  { %v1573_v6 = vpop.eup %1572 }
 0x22a   :  { %v630_v7 = vmul.f32 %v1573_v6, %v628_v2  ;;  %vm636_vm6 = vweird.f32 %v1573_v6 }
 0x22b   :  { %vm637_vm8 = vmor %vm635_vm7, %vm636_vm6 }
 0x22c   :  { %v631_v8 = vmul.f32 %v1573_v6, %v630_v7 }
 0x22e   :  { %v632_v56 = vmul.f32 0.5, %v631_v8 }
 0x230   :  { %v633_v10 = vsub.f32 1.5, %v632_v56 }
 0x232   :  { %v634_v11 = vmul.f32 %v1573_v6, %v633_v10 }
 0x234   :  { %v638_v14 = vsel %vm637_vm8, %v1573_v6, %v634_v11 }
 0x235   :  { %v639_v15 = vmul.f32 %v638_v14, %v626_v1  ;;  %v640_v16 = vmul.f32 %v638_v14, %v627_v12  ;;  %v1014_v14 = vld [vmem:[%s2576_s11 + $0x30] sm:$0xff] }
 0x237   :  { %v644_v19 = vmul.f32 %v1564_v13, %v639_v15  ;;  %v645_v20 = vmul.f32 %v1564_v13, %v640_v16  ;;  %v1015_v13 = vld [vmem:[%s2576_s11 + $0x38] sm:$0xff]  ;;  %v1013_v15 = vld [vmem:[%s2576_s11 + $0x28] sm:$0xff]  ;;  %v1012_v16 = vld [vmem:[%s2576_s11 + $0x20] sm:$0xff] }
 0x238   :  { %1032 = vmatpush.msra.mxu2 %v1015_v13  ;;  %1057 = vmatpush.msra.mxu3 %v1015_v13  ;;  %v1553_v13 = vld [vmem:[%s2579_s12 + $0x24] sm:$0xf0] }
 0x239   :  { %v649_v18 = vadd.f32 %v1565_v17, %v644_v19  ;;  %v650_v21 = vadd.f32 %v1565_v17, %v645_v20  ;;  %v1011_v17 = vld [vmem:[%s2576_s11 + $0x18] sm:$0xff]  ;;  %v1010_v19 = vld [vmem:[%s2576_s11 + $0x10] sm:$0xff]  ;;  %v1009_v20 = vld [vmem:[%s2576_s11 + $0x8] sm:$0xff] }
 0x23a   :  { %1033 = vmatpush.msra.mxu2 %v1014_v14  ;;  %1058 = vmatpush.msra.mxu3 %v1014_v14 }
 0x23b   :  { %v651_v22 = vmax.f32 %v649_v18, 0.0  ;;  %v652_v23 = vmax.f32 %v650_v21, 0.0  ;;  %v1008_v18 = vld [vmem:[%s2576_s11] sm:$0xff] }
 0x23c   :  { %1034 = vmatpush.msra.mxu2 %v1013_v15  ;;  %1059 = vmatpush.msra.mxu3 %v1013_v15  ;;  %v1552_v15 = vld [vmem:[%s2579_s12 + $0x24] sm:$0xf] }
 0x23d   :  { %v654_v24 = vrot.slane %v651_v22, 7  ;;  %v664_v25 = vrot.slane %v652_v23, 7 }
 0x23e   :  { %1035 = vmatpush.msra.mxu2 %v1012_v16  ;;  %1060 = vmatpush.msra.mxu3 %v1012_v16  ;;  %v1464_v16 = vld [vmem:[%s2579_s12 + $0x28] sm:$0xf0] }
 0x23f   :  { %v657_v26 = vsel %vm656_vm9, 0.0, %v654_v24  ;;  %v658_v27 = vsel %vm656_vm9, %v654_v24, 0.0  ;;  %v666_v28 = vsel %vm656_vm9, 0.0, %v664_v25  ;;  %v667_v29 = vsel %vm656_vm9, %v664_v25, 0.0 }
 0x240   :  { %v659_v30 = vpack.c.bf16 %v657_v26, %v657_v26  ;;  %v660_v31 = vpack.c.bf16 %v658_v27, %v658_v27  ;;  %v668_v32 = vpack.c.bf16 %v666_v28, %v666_v28  ;;  %v669_v33 = vpack.c.bf16 %v667_v29, %v667_v29  ;;  %1036 = vmatpush.msra.mxu2 %v1011_v17 }
 0x241   :  { %1061 = vmatpush.msra.mxu3 %v1011_v17  ;;  %v1454_v17 = vld [vmem:[%s2579_s12 + $0x10] sm:$0xf] }
 0x242   :  { %661 = vst [vmem:[#allocation2] sm:$0xf] %v659_v30  ;;  %v675_v34 = vrot.slane %v668_v32, 7  ;;  %v677_v36 = vrot.slane %v669_v33, 7  ;;  %1037 = vmatpush.msra.mxu2 %v1010_v19 }
 0x243   :  { %662 = vst [vmem:[#allocation2 + $0x4] sm:$0x1] %v660_v31  ;;  %1062 = vmatpush.msra.mxu3 %v1010_v19 }
 0x244   :  { %v676_v35 = vrot.slane %v675_v34, 4  ;;  %681 = vst [vmem:[#allocation2 + $0x4] sm:$0xe] %v675_v34  ;;  %1038 = vmatpush.msra.mxu2 %v1009_v20 }
 0x245   :  { %1063 = vmatpush.msra.mxu3 %v1009_v20 }
 0x246   :  { %v678_v39 = vsel %vm674_vm11, %v676_v35, %v677_v36  ;;  %1039 = vmatpush.msra.mxu2 %v1008_v18 }
 0x247   :  { %682 = vst [vmem:[#allocation2 + $0x8] sm:$0x3] %v678_v39  ;;  %1064 = vmatpush.msra.mxu3 %v1008_v18  ;;  %v1502_v39 = vld [vmem:[%s2579_s12 + $0x70] sm:$0xf]  ;;  %v1467_v18 = vor.u32 %v1552_v15, %v1464_v16 }
 0x249   :  { %v683_v41 = vld [vmem:[#allocation2] sm:$0xf] }
 0x24a   :  { %v853_v42 = vld [vmem:[#allocation2] sm:$0xe]  ;;  %v700_v44 = vld [vmem:[#allocation2 + $0x4] sm:$0x1]  ;;  %v720_v45 = vunpack.c.l.b16 %v683_v41  ;;  %848 = vmatmul.bf16.vlgmr.msrb.gmra.mxu1 %v683_v41  ;;  %v1562_v41 = vld [vmem:[%s2579_s12 + $0x74] sm:$0xf] }
 0x24b   :  { %v872_v46 = vunpack.c.l.b16 %v853_v42  ;;  %v721_v47 = vunpack.c.l.b16 %v700_v44  ;;  %v938_v49 = vld [vmem:[#allocation2 + $0x4] sm:$0xe]  ;;  %v1503_v42 = vor.u32 %v1563_v40, %v1502_v39  ;;  %v1507_v44 = vor.u32 %v1562_v41, %v1504_v43 }
 0x24c   :  { %v943_v54 = vunpack.c.l.b16 %v938_v49  ;;  %v986_v58 = vld [vmem:[#allocation2 + $0x4] sm:$0xc]  ;;  %v1496_v49 = vld [vmem:[%s2579_s12 + $0x68] sm:$0xf0] }
 0x24d   :  { %v722_v57 = vpack.c.b16 %v721_v47, %v720_v45  ;;  %v873_v0 = vpack.c.b16 %v721_v47, %v872_v46  ;;  %v988_v2 = vunpack.c.l.b16 %v986_v58  ;;  %1230 = vmatpush.bf16.msrb.mxu1 %v1507_v44  ;;  %v1494_v45 = vld [vmem:[%s2579_s12 + $0x60] sm:$0xf]  ;;  %v1561_v46 = vld [vmem:[%s2579_s12 + $0x64] sm:$0xf0]  ;;  %v1560_v47 = vld [vmem:[%s2579_s12 + $0x64] sm:$0xf] }
 0x24e   :  { %v940_v51 = vld [vmem:[#allocation2 + $0x8] sm:$0x3]  ;;  %v1495_v48 = vor.u32 %v1561_v46, %v1494_v45 }
 0x24f   :  { %v726_v52 = vshll.u32 %v722_v57, 16  ;;  %v874_v53 = vrot.slane %v873_v0, 1  ;;  %v944_v55 = vunpack.c.l.b16 %v940_v51  ;;  %v724_v60 = vshrl.u32 %v722_v57, 16  ;;  %v939_v10 = vld [vmem:[#allocation2 + $0x8] sm:$0x1] }
 0x250   :  { %v969_v11 = vunpack.c.l.b16 %v939_v10  ;;  %v1499_v57 = vor.u32 %v1560_v47, %v1496_v49  ;;  %v1486_v0 = vld [vmem:[%s2579_s12 + $0x50] sm:$0xf]  ;;  %v1558_v51 = vld [vmem:[%s2579_s12 + $0x54] sm:$0xf] }
 0x251   :  { %v728_v61 = vrot.slane %v726_v52, 1  ;;  %932 = vmatmul.bf16.vlgmr.msrb.gmra.mxu2 %v874_v53  ;;  %v945_v62 = vpack.c.b16 %v944_v55, %v943_v54  ;;  %v989_v6 = vpack.c.b16 %v944_v55, %v988_v2  ;;  %v1487_v53 = vor.u32 %v1559_v50, %v1486_v0 }
 0x252   :  { %v970_v1 = vpack.c.b16 %v969_v11, %v943_v54  ;;  %1231 = vmatpush.bf16.msrb.mxu1 %v1499_v57  ;;  %v1488_v54 = vld [vmem:[%s2579_s12 + $0x58] sm:$0xf0] }
 0x253   :  { %v729_v3 = vor.u32 %v728_v61, %v724_v60  ;;  %v947_v4 = vshrl.u32 %v945_v62, 16  ;;  %v950_v5 = vshll.u32 %v945_v62, 16  ;;  %v990_v56 = vrot.slane %v989_v6, 2  ;;  %v1557_v60 = vld [vmem:[%s2579_s12 + $0x44] sm:$0xf0] }
 0x254   :  { %v971_v12 = vrot.slane %v970_v1, 1  ;;  %v1491_v55 = vor.u32 %v1558_v51, %v1488_v54  ;;  %v1556_v61 = vld [vmem:[%s2579_s12 + $0x44] sm:$0xf]  ;;  %v1479_v62 = vor.u32 %v1557_v60, %v1478_v59 }
 0x255   :  { %787 = vmatmul.bf16.vlgmr.msrb.gmra.mxu0 %v729_v3  ;;  %v949_v7 = vrot.slane %v947_v4, 1  ;;  %v952_v8 = vrot.slane %v950_v5, 2  ;;  %v1483_v2 = vor.u32 %v1556_v61, %v1480_v63  ;;  %v1470_v3 = vld [vmem:[%s2579_s12 + $0x30] sm:$0xf]  ;;  %v1555_v4 = vld [vmem:[%s2579_s12 + $0x34] sm:$0xf0] }
 0x256   :  { %1216 = vmatpush.bf16.msrb.mxu0 %v1503_v42  ;;  %1232 = vmatpush.bf16.msrb.mxu1 %v1491_v55  ;;  %v1554_v5 = vld [vmem:[%s2579_s12 + $0x34] sm:$0xf] }
 0x257   :  { %v953_v9 = vor.u32 %v952_v8, %v949_v7  ;;  %v1471_v7 = vor.u32 %v1555_v4, %v1470_v3  ;;  %v1472_v8 = vld [vmem:[%s2579_s12 + $0x38] sm:$0xf0]  ;;  %v1133_v3 = vld [vmem:[%s2568_s0 + $0x8] sm:$0xff] }
 0x259   :  { %963 = vmatmul.bf16.vlgmr.msrb.gmra.mxu3 %v953_v9 }
 0x25a   :  { %1000 = vmatmul.bf16.vlgmr.msra.gmra.mxu1 %v990_v56  ;;  %1217 = vmatpush.bf16.msrb.mxu0 %v1495_v48  ;;  %v1475_v56 = vor.u32 %v1554_v5, %v1472_v8 }
 0x25b   :  { %1233 = vmatpush.bf16.msrb.mxu1 %v1483_v2 }
 0x25e   :  { %1218 = vmatpush.bf16.msrb.mxu0 %v1487_v53 }
 0x25f   :  { %1234 = vmatpush.bf16.msrb.mxu1 %v1475_v56 }
 0x262   :  { %1219 = vmatpush.bf16.msrb.mxu0 %v1479_v62 }
 0x263   :  { %1235 = vmatpush.bf16.msrb.mxu1 %v1467_v18 }
 0x265   :  { %981 = vmatmul.bf16.vlgmr.msra.gmra.mxu0 %v971_v12  ;;  %v1462_v12 = vld [vmem:[%s2579_s12 + $0x20] sm:$0xf] }
 0x266   :  { %1220 = vmatpush.bf16.msrb.mxu0 %v1471_v7  ;;  %v1463_v14 = vor.u32 %v1553_v13, %v1462_v12 }
 0x26a   :  { %1221 = vmatpush.bf16.msrb.mxu0 %v1463_v14 }
 0x2c7   :  { %v849_v21 = vpop.f32.mrf.mxu1 }
 0x2cf   :  { %v851_v22 = vpop.f32.mrf.mxu1 }
 0x2d0   :  { %v1550_v22 = vld [vmem:[%s2579_s12 + $0x14] sm:$0xf] }
 0x2d2   :  { %v788_v23 = vpop.f32.mrf.mxu0 }
 0x2d3   :  { %v850_v24 = vadd.f32 %v849_v21, %v788_v23  ;;  %v1551_v21 = vld [vmem:[%s2579_s12 + $0x14] sm:$0xf0] }
 0x2d4   :  { %v933_v25 = vpop.f32.mrf.mxu2  ;;  %v1455_v23 = vor.u32 %v1551_v21, %v1454_v17 }
 0x2d5   :  { %v2429_v26 = vadd.f32 %v933_v25, %v850_v24  ;;  %v1456_v24 = vld [vmem:[%s2579_s12 + $0x18] sm:$0xf0] }
 0x2d6   :  { %1222 = vmatpush.bf16.msrb.mxu0 %v1455_v23 }
 0x2d7   :  { %v1047_v27 = vmul.f32 %v2429_v26, %v2429_v26  ;;  %1040 = vmatmul.f32.vlgmr.msra.gmra.mxu2 %v2429_v26  ;;  %v1001_v28 = vpop.f32.mrf.mxu1 }
 0x2d9   :  { %1065 = vmatmul.f32.vlgmr.msra.gmra.mxu3 %v1047_v27 }
 0x2da   :  { %v790_v29 = vpop.f32.mrf.mxu0 }
 0x2db   :  { %v1446_v29 = vld [vmem:[%s2579_s12] sm:$0xf] }
 0x2dc   :  { %v935_v30 = vpop.f32.mrf.mxu2  ;;  %v964_v31 = vpop.f32.mrf.mxu3 }
 0x2dd   :  { %v1549_v30 = vld [vmem:[%s2579_s12 + $0x4] sm:$0xf0] }
 0x2df   :  { %v1003_v32 = vpop.f32.mrf.mxu1 }
 0x2e0   :  { %v1448_v32 = vld [vmem:[%s2579_s12 + $0x8] sm:$0xf0] }
 0x2e2   :  { %v982_v33 = vpop.f32.mrf.mxu0 }
 0x2e3   :  { %v983_v34 = vadd.f32 %v982_v33, %v964_v31  ;;  %v1548_v31 = vld [vmem:[%s2579_s12 + $0x4] sm:$0xf] }
 0x2e4   :  { %v966_v35 = vpop.f32.mrf.mxu3  ;;  %v1451_v39 = vor.u32 %v1548_v31, %v1448_v32 }
 0x2e5   :  { %v2434_v36 = vadd.f32 %v1001_v28, %v983_v34  ;;  %v1459_v28 = vor.u32 %v1550_v22, %v1456_v24  ;;  %v1447_v35 = vor.u32 %v1549_v30, %v1446_v29 }
 0x2e7   :  { %1043 = vmatmul.f32.gmra.mxu2 %v2434_v36  ;;  %v1048_v37 = vmul.f32 %v2434_v36, %v2434_v36  ;;  %1236 = vmatpush.bf16.msrb.mxu1 %v1459_v28 }
 0x2e8   :  { %1223 = vmatpush.bf16.msrb.mxu0 %v1447_v35 }
 0x2e9   :  { %1068 = vmatmul.f32.gmra.mxu3 %v1048_v37 }
 0x2ea   :  { %v984_v38 = vpop.f32.mrf.mxu0 }
 0x2eb   :  { %1237 = vmatpush.bf16.msrb.mxu1 %v1451_v39 }
 0x35a   :  { %v1041_v52 = vpop.f32.mrf.mxu2 }
 0x35c   :  { %v1066_v58 = vpop.f32.mrf.mxu3 }
 0x36a   :  { %v1044_v6 = vpop.f32.mrf.mxu2 }
 0x36b   :  { %v1072_v9 = vadd.f32 %v1044_v6, %v1041_v52  ;;  %v1566_v52 = vld [vmem:[%s2577_s9] ss:$0 sm:$0xff] }
 0x36c   :  { %v1069_v10 = vpop.f32.mrf.mxu3 }
 0x36d   :  { %v1073_v11 = vrot.slane %v1072_v9, 4  ;;  %v1079_v1 = vadd.f32 %v1069_v10, %v1066_v58  ;;  %v1567_v58 = vld [vmem:[%s2578_s10] ss:$0 sm:$0xff] }
 0x36f   :  { %v1074_v19 = vadd.f32 %v1073_v11, %v1072_v9  ;;  %v1080_v20 = vrot.slane %v1079_v1, 4 }
 0x371   :  { %v1075_v25 = vrot.slane %v1074_v19, 2  ;;  %v1081_v27 = vadd.f32 %v1080_v20, %v1079_v1 }
 0x373   :  { %v1076_v33 = vadd.f32 %v1075_v25, %v1074_v19  ;;  %v1082_v34 = vrot.slane %v1081_v27, 2 }
 0x375   :  { %v1077_v37 = vrot.slane %v1076_v33, 1  ;;  %v1083_v38 = vadd.f32 %v1082_v34, %v1081_v27 }
 0x377   :  { %v1078_v40 = vadd.f32 %v1077_v37, %v1076_v33  ;;  %v1084_v41 = vrot.slane %v1083_v38, 1 }
 0x379   :  { %v1085_v42 = vadd.f32 %v1084_v41, %v1083_v38  ;;  %v1086_v43 = vmul.f32 %v1078_v40, %v1078_v40  ;;  %v1088_v50 = vsub.f32 %v2429_v26, %v1078_v40  ;;  %v1089_v51 = vsub.f32 %v2434_v36, %v1078_v40  ;;  %v1132_v36 = vld [vmem:[%s2568_s0] sm:$0xff] }
 0x37b   :  { %v1087_v44 = vsub.f32 %v1085_v42, %v1086_v43 }
 0x37d   :  { %v1090_v45 = vadd.f32 1e-05, %v1087_v44 }
 0x37f   :  { %1574 = vrsqrt.f32 %v1090_v45  ;;  %vm1097_vm13 = vweird.f32 %v1090_v45 }
 0x385   :  { %v1575_v46 = vpop.eup %1574 }
 0x386   :  { %v1092_v47 = vmul.f32 %v1575_v46, %v1090_v45  ;;  %vm1098_vm12 = vweird.f32 %v1575_v46 }
 0x387   :  { %vm1099_vm14 = vmor %vm1097_vm13, %vm1098_vm12 }
 0x388   :  { %v1093_v48 = vmul.f32 %v1575_v46, %v1092_v47 }
 0x38a   :  { %v1094_v49 = vmul.f32 0.5, %v1093_v48 }
 0x38c   :  { %v1095_v57 = vsub.f32 1.5, %v1094_v49 }
 0x38e   :  { %v1096_v0 = vmul.f32 %v1575_v46, %v1095_v57 }
 0x390   :  { %v1100_v53 = vsel %vm1099_vm14, %v1575_v46, %v1096_v0 }
 0x391   :  { %v1101_v54 = vmul.f32 %v1100_v53, %v1088_v50  ;;  %v1102_v55 = vmul.f32 %v1100_v53, %v1089_v51 }
 0x393   :  { %v1106_v59 = vmul.f32 %v1566_v52, %v1101_v54  ;;  %v1107_v60 = vmul.f32 %v1566_v52, %v1102_v55 }
 0x395   :  { %v1111_v61 = vadd.f32 %v1567_v58, %v1106_v59  ;;  %v1112_v62 = vadd.f32 %v1567_v58, %v1107_v60 }
 0x397   :  { %v1113_v63 = vmax.f32 %v1111_v61, 0.0  ;;  %v1114_v26 = vmax.f32 %v1112_v62, 0.0 }
 0x399   :  { %v1115_v2 = vpack.c.bf16 %v1114_v26, %v1113_v63 }
 0x39b   :  { %1224 = vmatmul.bf16.vlgmr.msrb.gmra.mxu0 %v1115_v2  ;;  %1238 = vmatmul.bf16.vlgmr.msrb.gmra.mxu1 %v1115_v2 }
 0x418   :  { %v1225_v4 = vpop.f32.mrf.mxu0  ;;  %v1239_v5 = vpop.f32.mrf.mxu1 }
 0x419   :  { %v1226_v6 = vadd.f32 %v1225_v4, %v1132_v36  ;;  %v1240_v7 = vadd.f32 %v1239_v5, %v1133_v3 }
 0x41b   :  { %1244 = vst [vmem:[%s2580_s13] sm:$0xff] %v1226_v6 }
 0x41c   :  { %1245 = vst [vmem:[%s2580_s13 + $0x8] sm:$0xff] %v1240_v7 }
 0x420   :  { %v1227_v56 = vpop.f32.mrf.mxu0  ;;  %v1241_v10 = vpop.f32.mrf.mxu1 }
 0x423   :  { %v1134_v8 = vld [vmem:[%s2568_s0 + $0x10] sm:$0xff]  ;;  %v1135_v9 = vld [vmem:[%s2568_s0 + $0x18] sm:$0xff] }
 0x424   :  { %v1228_v11 = vadd.f32 %v1227_v56, %v1134_v8  ;;  %v1242_v1 = vadd.f32 %v1241_v10, %v1135_v9 }
 0x426   :  { %1246 = vst [vmem:[%s2580_s13 + $0x10] sm:$0xff] %v1228_v11 }
 0x427   :  { %1247 = vst [vmem:[%s2580_s13 + $0x18] sm:$0xff] %v1242_v1 }

</bundles_post_ra>
